<compile_context>
chip_gen: v7x
topology: tpu7x:2x2x1
jax: 0.10.0
libtpu: 0.0.40
codegen_flags: <defaults>
</compile_context>

<pallas_src>
import functools

import jax
import jax.numpy as jnp
import numpy as np
from jax.experimental import pallas as pl
from jax.experimental.pallas import tpu as pltpu

LANES = 128


def _round_up(x, m):
    return (x + m - 1) // m * m


def _pad_axis_to(a, axis, size):
    if a.shape[axis] == size:
        return a
    pad = [(0, 0)] * a.ndim
    pad[axis] = (0, size - a.shape[axis])
    return jnp.pad(a, pad)


# ----------------------------------------------------------------------------
# Fused kernel:
#   conv1(3x3, stride) + BN1 + ReLU  ->  conv2(3x3, 1) + BN2  ->  SimAM
#   -> (+ downsample / identity residual)  ->  ReLU
# One grid step == one image; everything for that image stays resident in VMEM.
# ----------------------------------------------------------------------------
def _simam_block_kernel(x_ref, w1_ref, b1_ref, w2_ref, b2_ref, wds_ref, bds_ref,
                        o_ref, acc_ref, h1p_ref, *,
                        stride, Ho, Wo, Cin, Cp, lam):
    M = Ho * Wo
    f32 = jnp.float32

    # ---- conv1: 9 shifted matmuls (per-tap K = Cin) accumulated in VMEM ----
    acc_ref[...] = jnp.zeros_like(acc_ref)
    for t in range(9):
        di, dj = t // 3, t % 3
        ai, pi = di // stride, di % stride
        aj, pj = dj // stride, dj % stride
        slab = x_ref[pi, pj, ai:ai + Ho, aj:aj + Wo, :]        # (Ho, Wo, Cin) f32
        lhs = slab.reshape(M, Cin).astype(w1_ref.dtype)        # bf16 MXU operand
        acc_ref[...] += jnp.dot(lhs, w1_ref[t], preferred_element_type=f32)
    h1 = jnp.maximum(acc_ref[...] + b1_ref[...], 0.0)          # folded-BN bias + ReLU

    # stage the zero-padded conv1 output for conv2's 3x3 taps
    h1p_ref[...] = jnp.zeros_like(h1p_ref)
    h1p_ref[1:1 + Ho, 1:1 + Wo, :] = h1.reshape(Ho, Wo, Cp)

    # ---- conv2 (stride 1): same 9-tap accumulation ----
    acc_ref[...] = jnp.zeros_like(acc_ref)
    for t in range(9):
        di, dj = t // 3, t % 3
        slab = h1p_ref[di:di + Ho, dj:dj + Wo, :]              # (Ho, Wo, Cp) f32
        lhs = slab.reshape(M, Cp).astype(w2_ref.dtype)
        acc_ref[...] += jnp.dot(lhs, w2_ref[t], preferred_element_type=f32)
    y = acc_ref[...] + b2_ref[...]                             # folded-BN bias

    # ---- SimAM: per-channel spatial mean/var (channels on lanes) ----
    mu = jnp.mean(y, axis=0, keepdims=True)                    # (1, Cp)
    d = (y - mu) ** 2
    v = jnp.sum(d, axis=0, keepdims=True) * (1.0 / (M - 1))
    e_inv = d * pl.reciprocal(4.0 * (v + lam), approx=True) + 0.5
    y = y * jax.nn.sigmoid(e_inv)

    # ---- residual: 1x1-conv+BN downsample, or exact f32 identity matmul ----
    q, r = 1 // stride, 1 % stride          # x[s*ho, s*wo] in parity-split coords
    res_slab = x_ref[r, r, q:q + Ho, q:q + Wo, :]              # (Ho, Wo, Cin)
    res2d = res_slab.reshape(M, Cin).astype(wds_ref.dtype)
    res = jnp.dot(res2d, wds_ref[...], preferred_element_type=f32) + bds_ref[...]

    o_ref[...] = jnp.maximum(y + res, 0.0)                     # lane-dense store


# ----------------------------------------------------------------------------
# Wrapper / glue
# ----------------------------------------------------------------------------
def fold_bn(gamma, beta, rmean, rvar, eps=1e-5):
    scale = gamma / jnp.sqrt(rvar + eps)
    bias = beta - rmean * scale
    return scale.astype(jnp.float32), bias.astype(jnp.float32)


def _pad_split_input(x_nchw, stride):
    """Pad (conv pad=1) and parity-split NCHW input to (N, s, s, Hq, Wq, C).

    x_split[n, rh, rw, qh, qw, c] == x_pad[n, c, s*qh + rh, s*qw + rw], so every
    3x3 tap of a stride-s conv becomes a contiguous (Ho, Wo, C) window.
    """
    N, C, H, W = x_nchw.shape
    Ho = (H - 1) // stride + 1
    Wo = (W - 1) // stride + 1
    Hq = Ho + 2 // stride
    Wq = Wo + 2 // stride
    Hp, Wp = stride * Hq, stride * Wq
    xp = jnp.pad(x_nchw, ((0, 0), (0, 0), (1, Hp - H - 1), (1, Wp - W - 1)))
    xs = xp.reshape(N, C, Hq, stride, Wq, stride)
    xs = jnp.transpose(xs, (0, 3, 5, 2, 4, 1))     # (N, s, s, Hq, Wq, C)
    return xs, Ho, Wo, Hq, Wq


def _vmem_bytes(shape, dtype):
    """Conservative VMEM footprint of one buffer incl. lane/sublane tile padding."""
    itemsize = jnp.dtype(dtype).itemsize
    s = list(shape) if len(shape) >= 2 else [1] + list(shape)
    s[-1] = _round_up(s[-1], 128)
    s[-2] = _round_up(s[-2], 8 * 4 // itemsize)
    return int(np.prod(s)) * itemsize


def simam_basic_block_forward(x_nchw, params, stride, in_planes, planes,
                              lambda_p=1e-4):
    N, Cin, H, W = x_nchw.shape
    assert Cin == in_planes
    Cout = planes
    Cp = _round_up(Cout, LANES)                    # lane-dense channel padding

    # Fold BN (inference-mode running stats) into weights (scale) + bias.
    s1, b1 = fold_bn(**params["bn1"])
    s2, b2 = fold_bn(**params["bn2"])

    # conv weights OIHW -> (9 taps, Cin, Cout); BN scale on the output channel.
    w1 = jnp.transpose(params["w1"], (2, 3, 1, 0)).reshape(9, Cin, Cout)
    w1 = _pad_axis_to(w1 * s1[None, None, :], 2, Cp).astype(jnp.bfloat16)
    b1p = _pad_axis_to(b1.reshape(1, Cout), 1, Cp)

    w2 = jnp.transpose(params["w2"], (2, 3, 1, 0)).reshape(9, Cout, Cout)
    w2 = _pad_axis_to(_pad_axis_to(w2 * s2[None, None, :], 1, Cp), 2, Cp)
    w2 = w2.astype(jnp.bfloat16)
    b2p = _pad_axis_to(b2.reshape(1, Cout), 1, Cp)

    has_ds = (stride != 1) or (in_planes != planes)
    if has_ds:
        sd, bd = fold_bn(**params["bn_ds"])
        wds = jnp.transpose(params["w_ds"].reshape(Cout, Cin), (1, 0)) * sd[None, :]
        wds = _pad_axis_to(wds, 1, Cp).astype(jnp.bfloat16)
        bdp = _pad_axis_to(bd.reshape(1, Cout), 1, Cp)
    else:
        # Identity residual as an exact f32 matmul with a padded identity matrix
        # (single kernel code path, keeps lane-padded channels, negligible cost).
        wds = _pad_axis_to(jnp.eye(Cin, dtype=jnp.float32), 1, Cp)
        bdp = jnp.zeros((1, Cp), jnp.float32)

    xs, Ho, Wo, Hq, Wq = _pad_split_input(x_nchw, stride)
    M = Ho * Wo

    kern = functools.partial(_simam_block_kernel, stride=stride, Ho=Ho, Wo=Wo,
                             Cin=Cin, Cp=Cp, lam=float(lambda_p))

    in_arrays = [xs, w1, b1p, w2, b2p, wds, bdp]
    in_specs = [
        pl.BlockSpec((None, stride, stride, Hq, Wq, Cin),
                     lambda n: (n, 0, 0, 0, 0, 0)),
        pl.BlockSpec((9, Cin, Cp), lambda n: (0, 0, 0)),
        pl.BlockSpec((1, Cp), lambda n: (0, 0)),
        pl.BlockSpec((9, Cp, Cp), lambda n: (0, 0, 0)),
        pl.BlockSpec((1, Cp), lambda n: (0, 0)),
        pl.BlockSpec((Cin, Cp), lambda n: (0, 0)),
        pl.BlockSpec((1, Cp), lambda n: (0, 0)),
    ]
    scratch = [pltpu.VMEM((M, Cp), jnp.float32),                 # matmul accumulator
               pltpu.VMEM((Ho + 2, Wo + 2, Cp), jnp.float32)]    # padded conv1 output

    # Explicit VMEM budget (kept under v7x's 64 MiB); 2x for pipelined in/out blocks.
    vmem = (2 * (_vmem_bytes((stride, stride, Hq, Wq, Cin), jnp.float32)
                 + _vmem_bytes((M, Cp), jnp.float32))
            + 2 * sum(_vmem_bytes(a.shape, a.dtype) for a in in_arrays[1:])
            + _vmem_bytes((M, Cp), jnp.float32)
            + _vmem_bytes((Ho + 2, Wo + 2, Cp), jnp.float32))
    vmem_limit = int(min(max(2 * vmem, 16 * 2**20), 64 * 2**20))

    flops = 2 * N * M * (9 * Cin * Cp + 9 * Cp * Cp + Cin * Cp)
    bytes_accessed = int(sum(a.size * a.dtype.itemsize for a in in_arrays)
                         + N * M * Cp * 4)
    cost = pl.CostEstimate(flops=flops, transcendentals=N * M * Cp,
                           bytes_accessed=bytes_accessed)

    out = pl.pallas_call(
        kern,
        out_shape=jax.ShapeDtypeStruct((N, M, Cp), jnp.float32),
        grid_spec=pltpu.PrefetchScalarGridSpec(
            num_scalar_prefetch=0,
            grid=(N,),
            in_specs=in_specs,
            out_specs=pl.BlockSpec((None, M, Cp), lambda n: (n, 0, 0)),
            scratch_shapes=scratch,
        ),
        compiler_params=pltpu.CompilerParams(
            dimension_semantics=("parallel",),
            vmem_limit_bytes=vmem_limit),
        cost_estimate=cost,
    )(*in_arrays)

    # Back to NCHW, dropping the channel lane-padding (one fused XLA pass).
    y = out[:, :, :Cout].reshape(N, Ho, Wo, Cout)
    return jnp.transpose(y, (0, 3, 1, 2))


# ----------------------------------------------------------------------------
# Parameter setup (deterministic, synthetic)
# ----------------------------------------------------------------------------
def make_params(key, in_planes, planes):
    ks = jax.random.split(key, 12)

    def bn_params(k0, k1, k2, k3, c):
        return dict(
            gamma=1.0 + 0.1 * jax.random.normal(k0, (c,), jnp.float32),
            beta=0.1 * jax.random.normal(k1, (c,), jnp.float32),
            rmean=0.05 * jax.random.normal(k2, (c,), jnp.float32),
            rvar=1.0 + 0.2 * jax.random.uniform(k3, (c,), jnp.float32),
        )

    return dict(
        w1=0.1 * jax.random.normal(ks[0], (planes, in_planes, 3, 3), jnp.float32),
        bn1=bn_params(ks[1], ks[2], ks[3], ks[4], planes),
        w2=0.1 * jax.random.normal(ks[5], (planes, planes, 3, 3), jnp.float32),
        bn2=bn_params(ks[6], ks[7], ks[8], ks[9], planes),
        w_ds=0.1 * jax.random.normal(ks[10], (planes, in_planes, 1, 1), jnp.float32),
        bn_ds=bn_params(*jax.random.split(ks[11], 4), planes),
    )


# ----------------------------------------------------------------------------
# Pure-JAX reference (correctness check)
# ----------------------------------------------------------------------------
def _ref_conv(x, w, stride, pad):
    return jax.lax.conv_general_dilated(
        x, w, window_strides=(stride, stride), padding=((pad, pad), (pad, pad)),
        dimension_numbers=("NCHW", "OIHW", "NCHW"),
        precision=jax.lax.Precision.HIGHEST)


def _ref_bn(x, bn, eps=1e-5):
    g, b, rm, rv = bn["gamma"], bn["beta"], bn["rmean"], bn["rvar"]
    return ((x - rm[None, :, None, None]) / jnp.sqrt(rv[None, :, None, None] + eps)
            * g[None, :, None, None] + b[None, :, None, None])


def _ref_simam(x, lambda_p=1e-4):
    n = x.shape[2] * x.shape[3] - 1
    d = (x - x.mean(axis=(2, 3), keepdims=True)) ** 2
    v = d.sum(axis=(2, 3), keepdims=True) / n
    e_inv = d / (4 * (v + lambda_p)) + 0.5
    return x * jax.nn.sigmoid(e_inv)


def reference_forward(x, p, stride, in_planes, planes):
    out = jax.nn.relu(_ref_bn(_ref_conv(x, p["w1"], stride, 1), p["bn1"]))
    out = _ref_bn(_ref_conv(out, p["w2"], 1, 1), p["bn2"])
    out = _ref_simam(out)
    if stride != 1 or in_planes != planes:
        res = _ref_bn(_ref_conv(x, p["w_ds"], stride, 0), p["bn_ds"])
    else:
        res = x
    return jax.nn.relu(out + res)


# ----------------------------------------------------------------------------
if __name__ == "__main__":
    key = jax.random.PRNGKey(0)
    kx_a, kp_a, kx_b, kp_b = jax.random.split(key, 4)
    fwd = jax.jit(simam_basic_block_forward, static_argnums=(2, 3, 4))

    # Tolerance is set for the bf16 MXU operands (f32 accumulation).
    RTOL, ATOL = 3e-2, 3e-2

    # Config A: downsample path (stride 2, channel expansion), x = (2, 4, 16, 16).
    N, in_planes, H, W, planes, stride = 2, 4, 16, 16, 8, 2
    x = jax.random.normal(kx_a, (N, in_planes, H, W), jnp.float32)
    params = make_params(kp_a, in_planes, planes)
    y = jax.block_until_ready(fwd(x, params, stride, in_planes, planes))
    y_ref = jax.block_until_ready(
        reference_forward(x, params, stride, in_planes, planes))
    np.testing.assert_allclose(np.asarray(y), np.asarray(y_ref),
                               rtol=RTOL, atol=ATOL)

    # Config B: identity-residual path (stride 1, in_planes == planes).
    x2 = jax.random.normal(kx_b, (2, 8, 16, 16), jnp.float32)
    params2 = make_params(kp_b, 8, 8)
    y2 = jax.block_until_ready(fwd(x2, params2, 1, 8, 8))
    y2_ref = jax.block_until_ready(reference_forward(x2, params2, 1, 8, 8))
    np.testing.assert_allclose(np.asarray(y2), np.asarray(y2_ref),
                               rtol=RTOL, atol=ATOL)

    print("KERNEL_OK")
</pallas_src>

<mosaic_0001>
module attributes {stable_mosaic.version = 11 : i64} {
  func.func @_simam_block_kernel(%arg0: i32, %arg1: memref<1x2x2x9x9x4xf32, #tpu.memory_space<vmem>>, %arg2: memref<9x4x128xbf16, #tpu.memory_space<vmem>>, %arg3: memref<1x128xf32, #tpu.memory_space<vmem>>, %arg4: memref<9x128x128xbf16, #tpu.memory_space<vmem>>, %arg5: memref<1x128xf32, #tpu.memory_space<vmem>>, %arg6: memref<4x128xbf16, #tpu.memory_space<vmem>>, %arg7: memref<1x128xf32, #tpu.memory_space<vmem>>, %arg8: memref<1x64x128xf32, #tpu.memory_space<vmem>>, %arg9: memref<64x128xf32, #tpu.memory_space<vmem>>, %arg10: memref<10x10x128xf32, #tpu.memory_space<vmem>>) attributes {dimension_semantics = [#tpu.dimension_semantics<parallel>], iteration_bounds = array<i64: 2>, scalar_prefetch = 0 : i64, scratch_operands = 2 : i64, tpu.core_type = #tpu.core_type<tc>, window_params = [{transform_indices = @transform_0, window_bounds = array<i64: 1, 2, 2, 9, 9, 4>}, {pipeline_mode = #tpu.pipeline_mode<synchronous>, transform_indices = @transform_1, window_bounds = array<i64: 9, 4, 128>}, {pipeline_mode = #tpu.pipeline_mode<synchronous>, transform_indices = @transform_2, window_bounds = array<i64: 1, 128>}, {pipeline_mode = #tpu.pipeline_mode<synchronous>, transform_indices = @transform_3, window_bounds = array<i64: 9, 128, 128>}, {pipeline_mode = #tpu.pipeline_mode<synchronous>, transform_indices = @transform_4, window_bounds = array<i64: 1, 128>}, {pipeline_mode = #tpu.pipeline_mode<synchronous>, transform_indices = @transform_5, window_bounds = array<i64: 4, 128>}, {pipeline_mode = #tpu.pipeline_mode<synchronous>, transform_indices = @transform_6, window_bounds = array<i64: 1, 128>}, {transform_indices = @transform_7, window_bounds = array<i64: 1, 64, 128>}]} {
    %cst = arith.constant 0.000000e+00 : f32
    %0 = vector.broadcast %cst : f32 to vector<64x128xf32>
    %c0 = arith.constant 0 : index
    %c0_0 = arith.constant 0 : index
    %1 = vector.load %arg9[%c0, %c0_0] : memref<64x128xf32, #tpu.memory_space<vmem>>, vector<64x128xf32>
    tpu.vector_store %arg9[%c0, %c0_0], %0 {strides = array<i32>} : memref<64x128xf32, #tpu.memory_space<vmem>>, vector<64x128xf32>,
    %c0_1 = arith.constant 0 : index
    %c0_2 = arith.constant 0 : index
    %c0_3 = arith.constant 0 : index
    %c0_4 = arith.constant 0 : index
    %c0_5 = arith.constant 0 : index
    %c0_6 = arith.constant 0 : index
    %2 = vector.load %arg1[%c0_1, %c0_2, %c0_3, %c0_4, %c0_5, %c0_6] : memref<1x2x2x9x9x4xf32, #tpu.memory_space<vmem>>, vector<1x1x1x8x8x4xf32>
    %3 = vector.shape_cast %2 : vector<1x1x1x8x8x4xf32> to vector<8x8x4xf32>
    %4 = vector.shape_cast %3 : vector<8x8x4xf32> to vector<64x4xf32>
    %5 = arith.truncf %4 : vector<64x4xf32> to vector<64x4xbf16>
    %c0_7 = arith.constant 0 : index
    %c0_8 = arith.constant 0 : index
    %6 = vector.load %arg9[%c0_7, %c0_8] : memref<64x128xf32, #tpu.memory_space<vmem>>, vector<64x128xf32>
    %c0_9 = arith.constant 0 : index
    %c0_10 = arith.constant 0 : index
    %c0_11 = arith.constant 0 : index
    %7 = vector.load %arg2[%c0_9, %c0_10, %c0_11] : memref<9x4x128xbf16, #tpu.memory_space<vmem>>, vector<1x4x128xbf16>
    %8 = vector.shape_cast %7 : vector<1x4x128xbf16> to vector<4x128xbf16>
    %cst_12 = arith.constant dense<0.000000e+00> : vector<64x128xf32>
    %9 = tpu.matmul %5, %8, %cst_12 {dimension_numbers = #tpu.dot_dimension_numbers<[1], [0], [0], [1], [0, 0, 1, 1], [], []>} : vector<64x4xbf16>, vector<4x128xbf16>, vector<64x128xf32> -> vector<64x128xf32>
    %10 = arith.addf %6, %9 : vector<64x128xf32>
    %c0_13 = arith.constant 0 : index
    %c0_14 = arith.constant 0 : index
    %11 = vector.load %arg9[%c0_13, %c0_14] : memref<64x128xf32, #tpu.memory_space<vmem>>, vector<64x128xf32>
    tpu.vector_store %arg9[%c0_13, %c0_14], %10 {strides = array<i32>} : memref<64x128xf32, #tpu.memory_space<vmem>>, vector<64x128xf32>,
    %c0_15 = arith.constant 0 : index
    %c0_16 = arith.constant 0 : index
    %c1 = arith.constant 1 : index
    %c0_17 = arith.constant 0 : index
    %c0_18 = arith.constant 0 : index
    %c0_19 = arith.constant 0 : index
    %12 = vector.load %arg1[%c0_15, %c0_16, %c1, %c0_17, %c0_18, %c0_19] : memref<1x2x2x9x9x4xf32, #tpu.memory_space<vmem>>, vector<1x1x1x8x8x4xf32>
    %13 = vector.shape_cast %12 : vector<1x1x1x8x8x4xf32> to vector<8x8x4xf32>
    %14 = vector.shape_cast %13 : vector<8x8x4xf32> to vector<64x4xf32>
    %15 = arith.truncf %14 : vector<64x4xf32> to vector<64x4xbf16>
    %c0_20 = arith.constant 0 : index
    %c0_21 = arith.constant 0 : index
    %16 = vector.load %arg9[%c0_20, %c0_21] : memref<64x128xf32, #tpu.memory_space<vmem>>, vector<64x128xf32>
    %c1_22 = arith.constant 1 : index
    %c0_23 = arith.constant 0 : index
    %c0_24 = arith.constant 0 : index
    %17 = vector.load %arg2[%c1_22, %c0_23, %c0_24] : memref<9x4x128xbf16, #tpu.memory_space<vmem>>, vector<1x4x128xbf16>
    %18 = vector.shape_cast %17 : vector<1x4x128xbf16> to vector<4x128xbf16>
    %cst_25 = arith.constant dense<0.000000e+00> : vector<64x128xf32>
    %19 = tpu.matmul %15, %18, %cst_25 {dimension_numbers = #tpu.dot_dimension_numbers<[1], [0], [0], [1], [0, 0, 1, 1], [], []>} : vector<64x4xbf16>, vector<4x128xbf16>, vector<64x128xf32> -> vector<64x128xf32>
    %20 = arith.addf %16, %19 : vector<64x128xf32>
    %c0_26 = arith.constant 0 : index
    %c0_27 = arith.constant 0 : index
    %21 = vector.load %arg9[%c0_26, %c0_27] : memref<64x128xf32, #tpu.memory_space<vmem>>, vector<64x128xf32>
    tpu.vector_store %arg9[%c0_26, %c0_27], %20 {strides = array<i32>} : memref<64x128xf32, #tpu.memory_space<vmem>>, vector<64x128xf32>,
    %c0_28 = arith.constant 0 : index
    %c0_29 = arith.constant 0 : index
    %c0_30 = arith.constant 0 : index
    %c0_31 = arith.constant 0 : index
    %c1_32 = arith.constant 1 : index
    %c0_33 = arith.constant 0 : index
    %22 = vector.load %arg1[%c0_28, %c0_29, %c0_30, %c0_31, %c1_32, %c0_33] : memref<1x2x2x9x9x4xf32, #tpu.memory_space<vmem>>, vector<1x1x1x8x8x4xf32>
    %23 = vector.shape_cast %22 : vector<1x1x1x8x8x4xf32> to vector<8x8x4xf32>
    %24 = vector.shape_cast %23 : vector<8x8x4xf32> to vector<64x4xf32>
    %25 = arith.truncf %24 : vector<64x4xf32> to vector<64x4xbf16>
    %c0_34 = arith.constant 0 : index
    %c0_35 = arith.constant 0 : index
    %26 = vector.load %arg9[%c0_34, %c0_35] : memref<64x128xf32, #tpu.memory_space<vmem>>, vector<64x128xf32>
    %c2 = arith.constant 2 : index
    %c0_36 = arith.constant 0 : index
    %c0_37 = arith.constant 0 : index
    %27 = vector.load %arg2[%c2, %c0_36, %c0_37] : memref<9x4x128xbf16, #tpu.memory_space<vmem>>, vector<1x4x128xbf16>
    %28 = vector.shape_cast %27 : vector<1x4x128xbf16> to vector<4x128xbf16>
    %cst_38 = arith.constant dense<0.000000e+00> : vector<64x128xf32>
    %29 = tpu.matmul %25, %28, %cst_38 {dimension_numbers = #tpu.dot_dimension_numbers<[1], [0], [0], [1], [0, 0, 1, 1], [], []>} : vector<64x4xbf16>, vector<4x128xbf16>, vector<64x128xf32> -> vector<64x128xf32>
    %30 = arith.addf %26, %29 : vector<64x128xf32>
    %c0_39 = arith.constant 0 : index
    %c0_40 = arith.constant 0 : index
    %31 = vector.load %arg9[%c0_39, %c0_40] : memref<64x128xf32, #tpu.memory_space<vmem>>, vector<64x128xf32>
    tpu.vector_store %arg9[%c0_39, %c0_40], %30 {strides = array<i32>} : memref<64x128xf32, #tpu.memory_space<vmem>>, vector<64x128xf32>,
    %c0_41 = arith.constant 0 : index
    %c1_42 = arith.constant 1 : index
    %c0_43 = arith.constant 0 : index
    %c0_44 = arith.constant 0 : index
    %c0_45 = arith.constant 0 : index
    %c0_46 = arith.constant 0 : index
    %32 = vector.load %arg1[%c0_41, %c1_42, %c0_43, %c0_44, %c0_45, %c0_46] : memref<1x2x2x9x9x4xf32, #tpu.memory_space<vmem>>, vector<1x1x1x8x8x4xf32>
    %33 = vector.shape_cast %32 : vector<1x1x1x8x8x4xf32> to vector<8x8x4xf32>
    %34 = vector.shape_cast %33 : vector<8x8x4xf32> to vector<64x4xf32>
    %35 = arith.truncf %34 : vector<64x4xf32> to vector<64x4xbf16>
    %c0_47 = arith.constant 0 : index
    %c0_48 = arith.constant 0 : index
    %36 = vector.load %arg9[%c0_47, %c0_48] : memref<64x128xf32, #tpu.memory_space<vmem>>, vector<64x128xf32>
    %c3 = arith.constant 3 : index
    %c0_49 = arith.constant 0 : index
    %c0_50 = arith.constant 0 : index
    %37 = vector.load %arg2[%c3, %c0_49, %c0_50] : memref<9x4x128xbf16, #tpu.memory_space<vmem>>, vector<1x4x128xbf16>
    %38 = vector.shape_cast %37 : vector<1x4x128xbf16> to vector<4x128xbf16>
    %cst_51 = arith.constant dense<0.000000e+00> : vector<64x128xf32>
    %39 = tpu.matmul %35, %38, %cst_51 {dimension_numbers = #tpu.dot_dimension_numbers<[1], [0], [0], [1], [0, 0, 1, 1], [], []>} : vector<64x4xbf16>, vector<4x128xbf16>, vector<64x128xf32> -> vector<64x128xf32>
    %40 = arith.addf %36, %39 : vector<64x128xf32>
    %c0_52 = arith.constant 0 : index
    %c0_53 = arith.constant 0 : index
    %41 = vector.load %arg9[%c0_52, %c0_53] : memref<64x128xf32, #tpu.memory_space<vmem>>, vector<64x128xf32>
    tpu.vector_store %arg9[%c0_52, %c0_53], %40 {strides = array<i32>} : memref<64x128xf32, #tpu.memory_space<vmem>>, vector<64x128xf32>,
    %c0_54 = arith.constant 0 : index
    %c1_55 = arith.constant 1 : index
    %c1_56 = arith.constant 1 : index
    %c0_57 = arith.constant 0 : index
    %c0_58 = arith.constant 0 : index
    %c0_59 = arith.constant 0 : index
    %42 = vector.load %arg1[%c0_54, %c1_55, %c1_56, %c0_57, %c0_58, %c0_59] : memref<1x2x2x9x9x4xf32, #tpu.memory_space<vmem>>, vector<1x1x1x8x8x4xf32>
    %43 = vector.shape_cast %42 : vector<1x1x1x8x8x4xf32> to vector<8x8x4xf32>
    %44 = vector.shape_cast %43 : vector<8x8x4xf32> to vector<64x4xf32>
    %45 = arith.truncf %44 : vector<64x4xf32> to vector<64x4xbf16>
    %c0_60 = arith.constant 0 : index
    %c0_61 = arith.constant 0 : index
    %46 = vector.load %arg9[%c0_60, %c0_61] : memref<64x128xf32, #tpu.memory_space<vmem>>, vector<64x128xf32>
    %c4 = arith.constant 4 : index
    %c0_62 = arith.constant 0 : index
    %c0_63 = arith.constant 0 : index
    %47 = vector.load %arg2[%c4, %c0_62, %c0_63] : memref<9x4x128xbf16, #tpu.memory_space<vmem>>, vector<1x4x128xbf16>
    %48 = vector.shape_cast %47 : vector<1x4x128xbf16> to vector<4x128xbf16>
    %cst_64 = arith.constant dense<0.000000e+00> : vector<64x128xf32>
    %49 = tpu.matmul %45, %48, %cst_64 {dimension_numbers = #tpu.dot_dimension_numbers<[1], [0], [0], [1], [0, 0, 1, 1], [], []>} : vector<64x4xbf16>, vector<4x128xbf16>, vector<64x128xf32> -> vector<64x128xf32>
    %50 = arith.addf %46, %49 : vector<64x128xf32>
    %c0_65 = arith.constant 0 : index
    %c0_66 = arith.constant 0 : index
    %51 = vector.load %arg9[%c0_65, %c0_66] : memref<64x128xf32, #tpu.memory_space<vmem>>, vector<64x128xf32>
    tpu.vector_store %arg9[%c0_65, %c0_66], %50 {strides = array<i32>} : memref<64x128xf32, #tpu.memory_space<vmem>>, vector<64x128xf32>,
    %c0_67 = arith.constant 0 : index
    %c1_68 = arith.constant 1 : index
    %c0_69 = arith.constant 0 : index
    %c0_70 = arith.constant 0 : index
    %c1_71 = arith.constant 1 : index
    %c0_72 = arith.constant 0 : index
    %52 = vector.load %arg1[%c0_67, %c1_68, %c0_69, %c0_70, %c1_71, %c0_72] : memref<1x2x2x9x9x4xf32, #tpu.memory_space<vmem>>, vector<1x1x1x8x8x4xf32>
    %53 = vector.shape_cast %52 : vector<1x1x1x8x8x4xf32> to vector<8x8x4xf32>
    %54 = vector.shape_cast %53 : vector<8x8x4xf32> to vector<64x4xf32>
    %55 = arith.truncf %54 : vector<64x4xf32> to vector<64x4xbf16>
    %c0_73 = arith.constant 0 : index
    %c0_74 = arith.constant 0 : index
    %56 = vector.load %arg9[%c0_73, %c0_74] : memref<64x128xf32, #tpu.memory_space<vmem>>, vector<64x128xf32>
    %c5 = arith.constant 5 : index
    %c0_75 = arith.constant 0 : index
    %c0_76 = arith.constant 0 : index
    %57 = vector.load %arg2[%c5, %c0_75, %c0_76] : memref<9x4x128xbf16, #tpu.memory_space<vmem>>, vector<1x4x128xbf16>
    %58 = vector.shape_cast %57 : vector<1x4x128xbf16> to vector<4x128xbf16>
    %cst_77 = arith.constant dense<0.000000e+00> : vector<64x128xf32>
    %59 = tpu.matmul %55, %58, %cst_77 {dimension_numbers = #tpu.dot_dimension_numbers<[1], [0], [0], [1], [0, 0, 1, 1], [], []>} : vector<64x4xbf16>, vector<4x128xbf16>, vector<64x128xf32> -> vector<64x128xf32>
    %60 = arith.addf %56, %59 : vector<64x128xf32>
    %c0_78 = arith.constant 0 : index
    %c0_79 = arith.constant 0 : index
    %61 = vector.load %arg9[%c0_78, %c0_79] : memref<64x128xf32, #tpu.memory_space<vmem>>, vector<64x128xf32>
    tpu.vector_store %arg9[%c0_78, %c0_79], %60 {strides = array<i32>} : memref<64x128xf32, #tpu.memory_space<vmem>>, vector<64x128xf32>,
    %c0_80 = arith.constant 0 : index
    %c0_81 = arith.constant 0 : index
    %c0_82 = arith.constant 0 : index
    %c1_83 = arith.constant 1 : index
    %c0_84 = arith.constant 0 : index
    %c0_85 = arith.constant 0 : index
    %62 = vector.load %arg1[%c0_80, %c0_81, %c0_82, %c1_83, %c0_84, %c0_85] : memref<1x2x2x9x9x4xf32, #tpu.memory_space<vmem>>, vector<1x1x1x8x8x4xf32>
    %63 = vector.shape_cast %62 : vector<1x1x1x8x8x4xf32> to vector<8x8x4xf32>
    %64 = vector.shape_cast %63 : vector<8x8x4xf32> to vector<64x4xf32>
    %65 = arith.truncf %64 : vector<64x4xf32> to vector<64x4xbf16>
    %c0_86 = arith.constant 0 : index
    %c0_87 = arith.constant 0 : index
    %66 = vector.load %arg9[%c0_86, %c0_87] : memref<64x128xf32, #tpu.memory_space<vmem>>, vector<64x128xf32>
    %c6 = arith.constant 6 : index
    %c0_88 = arith.constant 0 : index
    %c0_89 = arith.constant 0 : index
    %67 = vector.load %arg2[%c6, %c0_88, %c0_89] : memref<9x4x128xbf16, #tpu.memory_space<vmem>>, vector<1x4x128xbf16>
    %68 = vector.shape_cast %67 : vector<1x4x128xbf16> to vector<4x128xbf16>
    %cst_90 = arith.constant dense<0.000000e+00> : vector<64x128xf32>
    %69 = tpu.matmul %65, %68, %cst_90 {dimension_numbers = #tpu.dot_dimension_numbers<[1], [0], [0], [1], [0, 0, 1, 1], [], []>} : vector<64x4xbf16>, vector<4x128xbf16>, vector<64x128xf32> -> vector<64x128xf32>
    %70 = arith.addf %66, %69 : vector<64x128xf32>
    %c0_91 = arith.constant 0 : index
    %c0_92 = arith.constant 0 : index
    %71 = vector.load %arg9[%c0_91, %c0_92] : memref<64x128xf32, #tpu.memory_space<vmem>>, vector<64x128xf32>
    tpu.vector_store %arg9[%c0_91, %c0_92], %70 {strides = array<i32>} : memref<64x128xf32, #tpu.memory_space<vmem>>, vector<64x128xf32>,
    %c0_93 = arith.constant 0 : index
    %c0_94 = arith.constant 0 : index
    %c1_95 = arith.constant 1 : index
    %c1_96 = arith.constant 1 : index
    %c0_97 = arith.constant 0 : index
    %c0_98 = arith.constant 0 : index
    %72 = vector.load %arg1[%c0_93, %c0_94, %c1_95, %c1_96, %c0_97, %c0_98] : memref<1x2x2x9x9x4xf32, #tpu.memory_space<vmem>>, vector<1x1x1x8x8x4xf32>
    %73 = vector.shape_cast %72 : vector<1x1x1x8x8x4xf32> to vector<8x8x4xf32>
    %74 = vector.shape_cast %73 : vector<8x8x4xf32> to vector<64x4xf32>
    %75 = arith.truncf %74 : vector<64x4xf32> to vector<64x4xbf16>
    %c0_99 = arith.constant 0 : index
    %c0_100 = arith.constant 0 : index
    %76 = vector.load %arg9[%c0_99, %c0_100] : memref<64x128xf32, #tpu.memory_space<vmem>>, vector<64x128xf32>
    %c7 = arith.constant 7 : index
    %c0_101 = arith.constant 0 : index
    %c0_102 = arith.constant 0 : index
    %77 = vector.load %arg2[%c7, %c0_101, %c0_102] : memref<9x4x128xbf16, #tpu.memory_space<vmem>>, vector<1x4x128xbf16>
    %78 = vector.shape_cast %77 : vector<1x4x128xbf16> to vector<4x128xbf16>
    %cst_103 = arith.constant dense<0.000000e+00> : vector<64x128xf32>
    %79 = tpu.matmul %75, %78, %cst_103 {dimension_numbers = #tpu.dot_dimension_numbers<[1], [0], [0], [1], [0, 0, 1, 1], [], []>} : vector<64x4xbf16>, vector<4x128xbf16>, vector<64x128xf32> -> vector<64x128xf32>
    %80 = arith.addf %76, %79 : vector<64x128xf32>
    %c0_104 = arith.constant 0 : index
    %c0_105 = arith.constant 0 : index
    %81 = vector.load %arg9[%c0_104, %c0_105] : memref<64x128xf32, #tpu.memory_space<vmem>>, vector<64x128xf32>
    tpu.vector_store %arg9[%c0_104, %c0_105], %80 {strides = array<i32>} : memref<64x128xf32, #tpu.memory_space<vmem>>, vector<64x128xf32>,
    %c0_106 = arith.constant 0 : index
    %c0_107 = arith.constant 0 : index
    %c0_108 = arith.constant 0 : index
    %c1_109 = arith.constant 1 : index
    %c1_110 = arith.constant 1 : index
    %c0_111 = arith.constant 0 : index
    %82 = vector.load %arg1[%c0_106, %c0_107, %c0_108, %c1_109, %c1_110, %c0_111] : memref<1x2x2x9x9x4xf32, #tpu.memory_space<vmem>>, vector<1x1x1x8x8x4xf32>
    %83 = vector.shape_cast %82 : vector<1x1x1x8x8x4xf32> to vector<8x8x4xf32>
    %84 = vector.shape_cast %83 : vector<8x8x4xf32> to vector<64x4xf32>
    %85 = arith.truncf %84 : vector<64x4xf32> to vector<64x4xbf16>
    %c0_112 = arith.constant 0 : index
    %c0_113 = arith.constant 0 : index
    %86 = vector.load %arg9[%c0_112, %c0_113] : memref<64x128xf32, #tpu.memory_space<vmem>>, vector<64x128xf32>
    %c8 = arith.constant 8 : index
    %c0_114 = arith.constant 0 : index
    %c0_115 = arith.constant 0 : index
    %87 = vector.load %arg2[%c8, %c0_114, %c0_115] : memref<9x4x128xbf16, #tpu.memory_space<vmem>>, vector<1x4x128xbf16>
    %88 = vector.shape_cast %87 : vector<1x4x128xbf16> to vector<4x128xbf16>
    %cst_116 = arith.constant dense<0.000000e+00> : vector<64x128xf32>
    %89 = tpu.matmul %85, %88, %cst_116 {dimension_numbers = #tpu.dot_dimension_numbers<[1], [0], [0], [1], [0, 0, 1, 1], [], []>} : vector<64x4xbf16>, vector<4x128xbf16>, vector<64x128xf32> -> vector<64x128xf32>
    %90 = arith.addf %86, %89 : vector<64x128xf32>
    %c0_117 = arith.constant 0 : index
    %c0_118 = arith.constant 0 : index
    %91 = vector.load %arg9[%c0_117, %c0_118] : memref<64x128xf32, #tpu.memory_space<vmem>>, vector<64x128xf32>
    tpu.vector_store %arg9[%c0_117, %c0_118], %90 {strides = array<i32>} : memref<64x128xf32, #tpu.memory_space<vmem>>, vector<64x128xf32>,
    %c0_119 = arith.constant 0 : index
    %c0_120 = arith.constant 0 : index
    %92 = vector.load %arg9[%c0_119, %c0_120] : memref<64x128xf32, #tpu.memory_space<vmem>>, vector<64x128xf32>
    %c0_121 = arith.constant 0 : index
    %c0_122 = arith.constant 0 : index
    %93 = vector.load %arg3[%c0_121, %c0_122] : memref<1x128xf32, #tpu.memory_space<vmem>>, vector<1x128xf32>
    %94 = vector.broadcast %93 : vector<1x128xf32> to vector<64x128xf32>
    %95 = arith.addf %92, %94 : vector<64x128xf32>
    %cst_123 = arith.constant 0.000000e+00 : f32
    %96 = vector.broadcast %cst_123 : f32 to vector<64x128xf32>
    %97 = arith.maximumf %95, %96 : vector<64x128xf32>
    %cst_124 = arith.constant 0.000000e+00 : f32
    %98 = vector.broadcast %cst_124 : f32 to vector<10x10x128xf32>
    %c0_125 = arith.constant 0 : index
    %c0_126 = arith.constant 0 : index
    %c0_127 = arith.constant 0 : index
    %99 = vector.load %arg10[%c0_125, %c0_126, %c0_127] : memref<10x10x128xf32, #tpu.memory_space<vmem>>, vector<10x10x128xf32>
    tpu.vector_store %arg10[%c0_125, %c0_126, %c0_127], %98 {strides = array<i32>} : memref<10x10x128xf32, #tpu.memory_space<vmem>>, vector<10x10x128xf32>,
    %100 = vector.shape_cast %97 : vector<64x128xf32> to vector<8x8x128xf32>
    %c1_128 = arith.constant 1 : index
    %c1_129 = arith.constant 1 : index
    %c0_130 = arith.constant 0 : index
    %101 = vector.load %arg10[%c1_128, %c1_129, %c0_130] : memref<10x10x128xf32, #tpu.memory_space<vmem>>, vector<8x8x128xf32>
    tpu.vector_store %arg10[%c1_128, %c1_129, %c0_130], %100 {strides = array<i32>} : memref<10x10x128xf32, #tpu.memory_space<vmem>>, vector<8x8x128xf32>,
    %cst_131 = arith.constant 0.000000e+00 : f32
    %102 = vector.broadcast %cst_131 : f32 to vector<64x128xf32>
    %c0_132 = arith.constant 0 : index
    %c0_133 = arith.constant 0 : index
    %103 = vector.load %arg9[%c0_132, %c0_133] : memref<64x128xf32, #tpu.memory_space<vmem>>, vector<64x128xf32>
    tpu.vector_store %arg9[%c0_132, %c0_133], %102 {strides = array<i32>} : memref<64x128xf32, #tpu.memory_space<vmem>>, vector<64x128xf32>,
    %c0_134 = arith.constant 0 : index
    %c0_135 = arith.constant 0 : index
    %c0_136 = arith.constant 0 : index
    %104 = vector.load %arg10[%c0_134, %c0_135, %c0_136] : memref<10x10x128xf32, #tpu.memory_space<vmem>>, vector<8x8x128xf32>
    %105 = vector.shape_cast %104 : vector<8x8x128xf32> to vector<64x128xf32>
    %106 = arith.truncf %105 : vector<64x128xf32> to vector<64x128xbf16>
    %c0_137 = arith.constant 0 : index
    %c0_138 = arith.constant 0 : index
    %107 = vector.load %arg9[%c0_137, %c0_138] : memref<64x128xf32, #tpu.memory_space<vmem>>, vector<64x128xf32>
    %c0_139 = arith.constant 0 : index
    %c0_140 = arith.constant 0 : index
    %c0_141 = arith.constant 0 : index
    %108 = vector.load %arg4[%c0_139, %c0_140, %c0_141] : memref<9x128x128xbf16, #tpu.memory_space<vmem>>, vector<1x128x128xbf16>
    %109 = vector.shape_cast %108 : vector<1x128x128xbf16> to vector<128x128xbf16>
    %cst_142 = arith.constant dense<0.000000e+00> : vector<64x128xf32>
    %110 = tpu.matmul %106, %109, %cst_142 {dimension_numbers = #tpu.dot_dimension_numbers<[1], [0], [0], [1], [0, 0, 1, 1], [], []>} : vector<64x128xbf16>, vector<128x128xbf16>, vector<64x128xf32> -> vector<64x128xf32>
    %111 = arith.addf %107, %110 : vector<64x128xf32>
    %c0_143 = arith.constant 0 : index
    %c0_144 = arith.constant 0 : index
    %112 = vector.load %arg9[%c0_143, %c0_144] : memref<64x128xf32, #tpu.memory_space<vmem>>, vector<64x128xf32>
    tpu.vector_store %arg9[%c0_143, %c0_144], %111 {strides = array<i32>} : memref<64x128xf32, #tpu.memory_space<vmem>>, vector<64x128xf32>,
    %c0_145 = arith.constant 0 : index
    %c1_146 = arith.constant 1 : index
    %c0_147 = arith.constant 0 : index
    %113 = vector.load %arg10[%c0_145, %c1_146, %c0_147] : memref<10x10x128xf32, #tpu.memory_space<vmem>>, vector<8x8x128xf32>
    %114 = vector.shape_cast %113 : vector<8x8x128xf32> to vector<64x128xf32>
    %115 = arith.truncf %114 : vector<64x128xf32> to vector<64x128xbf16>
    %c0_148 = arith.constant 0 : index
    %c0_149 = arith.constant 0 : index
    %116 = vector.load %arg9[%c0_148, %c0_149] : memref<64x128xf32, #tpu.memory_space<vmem>>, vector<64x128xf32>
    %c1_150 = arith.constant 1 : index
    %c0_151 = arith.constant 0 : index
    %c0_152 = arith.constant 0 : index
    %117 = vector.load %arg4[%c1_150, %c0_151, %c0_152] : memref<9x128x128xbf16, #tpu.memory_space<vmem>>, vector<1x128x128xbf16>
    %118 = vector.shape_cast %117 : vector<1x128x128xbf16> to vector<128x128xbf16>
    %cst_153 = arith.constant dense<0.000000e+00> : vector<64x128xf32>
    %119 = tpu.matmul %115, %118, %cst_153 {dimension_numbers = #tpu.dot_dimension_numbers<[1], [0], [0], [1], [0, 0, 1, 1], [], []>} : vector<64x128xbf16>, vector<128x128xbf16>, vector<64x128xf32> -> vector<64x128xf32>
    %120 = arith.addf %116, %119 : vector<64x128xf32>
    %c0_154 = arith.constant 0 : index
    %c0_155 = arith.constant 0 : index
    %121 = vector.load %arg9[%c0_154, %c0_155] : memref<64x128xf32, #tpu.memory_space<vmem>>, vector<64x128xf32>
    tpu.vector_store %arg9[%c0_154, %c0_155], %120 {strides = array<i32>} : memref<64x128xf32, #tpu.memory_space<vmem>>, vector<64x128xf32>,
    %c0_156 = arith.constant 0 : index
    %c2_157 = arith.constant 2 : index
    %c0_158 = arith.constant 0 : index
    %122 = vector.load %arg10[%c0_156, %c2_157, %c0_158] : memref<10x10x128xf32, #tpu.memory_space<vmem>>, vector<8x8x128xf32>
    %123 = vector.shape_cast %122 : vector<8x8x128xf32> to vector<64x128xf32>
    %124 = arith.truncf %123 : vector<64x128xf32> to vector<64x128xbf16>
    %c0_159 = arith.constant 0 : index
    %c0_160 = arith.constant 0 : index
    %125 = vector.load %arg9[%c0_159, %c0_160] : memref<64x128xf32, #tpu.memory_space<vmem>>, vector<64x128xf32>
    %c2_161 = arith.constant 2 : index
    %c0_162 = arith.constant 0 : index
    %c0_163 = arith.constant 0 : index
    %126 = vector.load %arg4[%c2_161, %c0_162, %c0_163] : memref<9x128x128xbf16, #tpu.memory_space<vmem>>, vector<1x128x128xbf16>
    %127 = vector.shape_cast %126 : vector<1x128x128xbf16> to vector<128x128xbf16>
    %cst_164 = arith.constant dense<0.000000e+00> : vector<64x128xf32>
    %128 = tpu.matmul %124, %127, %cst_164 {dimension_numbers = #tpu.dot_dimension_numbers<[1], [0], [0], [1], [0, 0, 1, 1], [], []>} : vector<64x128xbf16>, vector<128x128xbf16>, vector<64x128xf32> -> vector<64x128xf32>
    %129 = arith.addf %125, %128 : vector<64x128xf32>
    %c0_165 = arith.constant 0 : index
    %c0_166 = arith.constant 0 : index
    %130 = vector.load %arg9[%c0_165, %c0_166] : memref<64x128xf32, #tpu.memory_space<vmem>>, vector<64x128xf32>
    tpu.vector_store %arg9[%c0_165, %c0_166], %129 {strides = array<i32>} : memref<64x128xf32, #tpu.memory_space<vmem>>, vector<64x128xf32>,
    %c1_167 = arith.constant 1 : index
    %c0_168 = arith.constant 0 : index
    %c0_169 = arith.constant 0 : index
    %131 = vector.load %arg10[%c1_167, %c0_168, %c0_169] : memref<10x10x128xf32, #tpu.memory_space<vmem>>, vector<8x8x128xf32>
    %132 = vector.shape_cast %131 : vector<8x8x128xf32> to vector<64x128xf32>
    %133 = arith.truncf %132 : vector<64x128xf32> to vector<64x128xbf16>
    %c0_170 = arith.constant 0 : index
    %c0_171 = arith.constant 0 : index
    %134 = vector.load %arg9[%c0_170, %c0_171] : memref<64x128xf32, #tpu.memory_space<vmem>>, vector<64x128xf32>
    %c3_172 = arith.constant 3 : index
    %c0_173 = arith.constant 0 : index
    %c0_174 = arith.constant 0 : index
    %135 = vector.load %arg4[%c3_172, %c0_173, %c0_174] : memref<9x128x128xbf16, #tpu.memory_space<vmem>>, vector<1x128x128xbf16>
    %136 = vector.shape_cast %135 : vector<1x128x128xbf16> to vector<128x128xbf16>
    %cst_175 = arith.constant dense<0.000000e+00> : vector<64x128xf32>
    %137 = tpu.matmul %133, %136, %cst_175 {dimension_numbers = #tpu.dot_dimension_numbers<[1], [0], [0], [1], [0, 0, 1, 1], [], []>} : vector<64x128xbf16>, vector<128x128xbf16>, vector<64x128xf32> -> vector<64x128xf32>
    %138 = arith.addf %134, %137 : vector<64x128xf32>
    %c0_176 = arith.constant 0 : index
    %c0_177 = arith.constant 0 : index
    %139 = vector.load %arg9[%c0_176, %c0_177] : memref<64x128xf32, #tpu.memory_space<vmem>>, vector<64x128xf32>
    tpu.vector_store %arg9[%c0_176, %c0_177], %138 {strides = array<i32>} : memref<64x128xf32, #tpu.memory_space<vmem>>, vector<64x128xf32>,
    %c1_178 = arith.constant 1 : index
    %c1_179 = arith.constant 1 : index
    %c0_180 = arith.constant 0 : index
    %140 = vector.load %arg10[%c1_178, %c1_179, %c0_180] : memref<10x10x128xf32, #tpu.memory_space<vmem>>, vector<8x8x128xf32>
    %141 = vector.shape_cast %140 : vector<8x8x128xf32> to vector<64x128xf32>
    %142 = arith.truncf %141 : vector<64x128xf32> to vector<64x128xbf16>
    %c0_181 = arith.constant 0 : index
    %c0_182 = arith.constant 0 : index
    %143 = vector.load %arg9[%c0_181, %c0_182] : memref<64x128xf32, #tpu.memory_space<vmem>>, vector<64x128xf32>
    %c4_183 = arith.constant 4 : index
    %c0_184 = arith.constant 0 : index
    %c0_185 = arith.constant 0 : index
    %144 = vector.load %arg4[%c4_183, %c0_184, %c0_185] : memref<9x128x128xbf16, #tpu.memory_space<vmem>>, vector<1x128x128xbf16>
    %145 = vector.shape_cast %144 : vector<1x128x128xbf16> to vector<128x128xbf16>
    %cst_186 = arith.constant dense<0.000000e+00> : vector<64x128xf32>
    %146 = tpu.matmul %142, %145, %cst_186 {dimension_numbers = #tpu.dot_dimension_numbers<[1], [0], [0], [1], [0, 0, 1, 1], [], []>} : vector<64x128xbf16>, vector<128x128xbf16>, vector<64x128xf32> -> vector<64x128xf32>
    %147 = arith.addf %143, %146 : vector<64x128xf32>
    %c0_187 = arith.constant 0 : index
    %c0_188 = arith.constant 0 : index
    %148 = vector.load %arg9[%c0_187, %c0_188] : memref<64x128xf32, #tpu.memory_space<vmem>>, vector<64x128xf32>
    tpu.vector_store %arg9[%c0_187, %c0_188], %147 {strides = array<i32>} : memref<64x128xf32, #tpu.memory_space<vmem>>, vector<64x128xf32>,
    %c1_189 = arith.constant 1 : index
    %c2_190 = arith.constant 2 : index
    %c0_191 = arith.constant 0 : index
    %149 = vector.load %arg10[%c1_189, %c2_190, %c0_191] : memref<10x10x128xf32, #tpu.memory_space<vmem>>, vector<8x8x128xf32>
    %150 = vector.shape_cast %149 : vector<8x8x128xf32> to vector<64x128xf32>
    %151 = arith.truncf %150 : vector<64x128xf32> to vector<64x128xbf16>
    %c0_192 = arith.constant 0 : index
    %c0_193 = arith.constant 0 : index
    %152 = vector.load %arg9[%c0_192, %c0_193] : memref<64x128xf32, #tpu.memory_space<vmem>>, vector<64x128xf32>
    %c5_194 = arith.constant 5 : index
    %c0_195 = arith.constant 0 : index
    %c0_196 = arith.constant 0 : index
    %153 = vector.load %arg4[%c5_194, %c0_195, %c0_196] : memref<9x128x128xbf16, #tpu.memory_space<vmem>>, vector<1x128x128xbf16>
    %154 = vector.shape_cast %153 : vector<1x128x128xbf16> to vector<128x128xbf16>
    %cst_197 = arith.constant dense<0.000000e+00> : vector<64x128xf32>
    %155 = tpu.matmul %151, %154, %cst_197 {dimension_numbers = #tpu.dot_dimension_numbers<[1], [0], [0], [1], [0, 0, 1, 1], [], []>} : vector<64x128xbf16>, vector<128x128xbf16>, vector<64x128xf32> -> vector<64x128xf32>
    %156 = arith.addf %152, %155 : vector<64x128xf32>
    %c0_198 = arith.constant 0 : index
    %c0_199 = arith.constant 0 : index
    %157 = vector.load %arg9[%c0_198, %c0_199] : memref<64x128xf32, #tpu.memory_space<vmem>>, vector<64x128xf32>
    tpu.vector_store %arg9[%c0_198, %c0_199], %156 {strides = array<i32>} : memref<64x128xf32, #tpu.memory_space<vmem>>, vector<64x128xf32>,
    %c2_200 = arith.constant 2 : index
    %c0_201 = arith.constant 0 : index
    %c0_202 = arith.constant 0 : index
    %158 = vector.load %arg10[%c2_200, %c0_201, %c0_202] : memref<10x10x128xf32, #tpu.memory_space<vmem>>, vector<8x8x128xf32>
    %159 = vector.shape_cast %158 : vector<8x8x128xf32> to vector<64x128xf32>
    %160 = arith.truncf %159 : vector<64x128xf32> to vector<64x128xbf16>
    %c0_203 = arith.constant 0 : index
    %c0_204 = arith.constant 0 : index
    %161 = vector.load %arg9[%c0_203, %c0_204] : memref<64x128xf32, #tpu.memory_space<vmem>>, vector<64x128xf32>
    %c6_205 = arith.constant 6 : index
    %c0_206 = arith.constant 0 : index
    %c0_207 = arith.constant 0 : index
    %162 = vector.load %arg4[%c6_205, %c0_206, %c0_207] : memref<9x128x128xbf16, #tpu.memory_space<vmem>>, vector<1x128x128xbf16>
    %163 = vector.shape_cast %162 : vector<1x128x128xbf16> to vector<128x128xbf16>
    %cst_208 = arith.constant dense<0.000000e+00> : vector<64x128xf32>
    %164 = tpu.matmul %160, %163, %cst_208 {dimension_numbers = #tpu.dot_dimension_numbers<[1], [0], [0], [1], [0, 0, 1, 1], [], []>} : vector<64x128xbf16>, vector<128x128xbf16>, vector<64x128xf32> -> vector<64x128xf32>
    %165 = arith.addf %161, %164 : vector<64x128xf32>
    %c0_209 = arith.constant 0 : index
    %c0_210 = arith.constant 0 : index
    %166 = vector.load %arg9[%c0_209, %c0_210] : memref<64x128xf32, #tpu.memory_space<vmem>>, vector<64x128xf32>
    tpu.vector_store %arg9[%c0_209, %c0_210], %165 {strides = array<i32>} : memref<64x128xf32, #tpu.memory_space<vmem>>, vector<64x128xf32>,
    %c2_211 = arith.constant 2 : index
    %c1_212 = arith.constant 1 : index
    %c0_213 = arith.constant 0 : index
    %167 = vector.load %arg10[%c2_211, %c1_212, %c0_213] : memref<10x10x128xf32, #tpu.memory_space<vmem>>, vector<8x8x128xf32>
    %168 = vector.shape_cast %167 : vector<8x8x128xf32> to vector<64x128xf32>
    %169 = arith.truncf %168 : vector<64x128xf32> to vector<64x128xbf16>
    %c0_214 = arith.constant 0 : index
    %c0_215 = arith.constant 0 : index
    %170 = vector.load %arg9[%c0_214, %c0_215] : memref<64x128xf32, #tpu.memory_space<vmem>>, vector<64x128xf32>
    %c7_216 = arith.constant 7 : index
    %c0_217 = arith.constant 0 : index
    %c0_218 = arith.constant 0 : index
    %171 = vector.load %arg4[%c7_216, %c0_217, %c0_218] : memref<9x128x128xbf16, #tpu.memory_space<vmem>>, vector<1x128x128xbf16>
    %172 = vector.shape_cast %171 : vector<1x128x128xbf16> to vector<128x128xbf16>
    %cst_219 = arith.constant dense<0.000000e+00> : vector<64x128xf32>
    %173 = tpu.matmul %169, %172, %cst_219 {dimension_numbers = #tpu.dot_dimension_numbers<[1], [0], [0], [1], [0, 0, 1, 1], [], []>} : vector<64x128xbf16>, vector<128x128xbf16>, vector<64x128xf32> -> vector<64x128xf32>
    %174 = arith.addf %170, %173 : vector<64x128xf32>
    %c0_220 = arith.constant 0 : index
    %c0_221 = arith.constant 0 : index
    %175 = vector.load %arg9[%c0_220, %c0_221] : memref<64x128xf32, #tpu.memory_space<vmem>>, vector<64x128xf32>
    tpu.vector_store %arg9[%c0_220, %c0_221], %174 {strides = array<i32>} : memref<64x128xf32, #tpu.memory_space<vmem>>, vector<64x128xf32>,
    %c2_222 = arith.constant 2 : index
    %c2_223 = arith.constant 2 : index
    %c0_224 = arith.constant 0 : index
    %176 = vector.load %arg10[%c2_222, %c2_223, %c0_224] : memref<10x10x128xf32, #tpu.memory_space<vmem>>, vector<8x8x128xf32>
    %177 = vector.shape_cast %176 : vector<8x8x128xf32> to vector<64x128xf32>
    %178 = arith.truncf %177 : vector<64x128xf32> to vector<64x128xbf16>
    %c0_225 = arith.constant 0 : index
    %c0_226 = arith.constant 0 : index
    %179 = vector.load %arg9[%c0_225, %c0_226] : memref<64x128xf32, #tpu.memory_space<vmem>>, vector<64x128xf32>
    %c8_227 = arith.constant 8 : index
    %c0_228 = arith.constant 0 : index
    %c0_229 = arith.constant 0 : index
    %180 = vector.load %arg4[%c8_227, %c0_228, %c0_229] : memref<9x128x128xbf16, #tpu.memory_space<vmem>>, vector<1x128x128xbf16>
    %181 = vector.shape_cast %180 : vector<1x128x128xbf16> to vector<128x128xbf16>
    %cst_230 = arith.constant dense<0.000000e+00> : vector<64x128xf32>
    %182 = tpu.matmul %178, %181, %cst_230 {dimension_numbers = #tpu.dot_dimension_numbers<[1], [0], [0], [1], [0, 0, 1, 1], [], []>} : vector<64x128xbf16>, vector<128x128xbf16>, vector<64x128xf32> -> vector<64x128xf32>
    %183 = arith.addf %179, %182 : vector<64x128xf32>
    %c0_231 = arith.constant 0 : index
    %c0_232 = arith.constant 0 : index
    %184 = vector.load %arg9[%c0_231, %c0_232] : memref<64x128xf32, #tpu.memory_space<vmem>>, vector<64x128xf32>
    tpu.vector_store %arg9[%c0_231, %c0_232], %183 {strides = array<i32>} : memref<64x128xf32, #tpu.memory_space<vmem>>, vector<64x128xf32>,
    %c0_233 = arith.constant 0 : index
    %c0_234 = arith.constant 0 : index
    %185 = vector.load %arg9[%c0_233, %c0_234] : memref<64x128xf32, #tpu.memory_space<vmem>>, vector<64x128xf32>
    %c0_235 = arith.constant 0 : index
    %c0_236 = arith.constant 0 : index
    %186 = vector.load %arg5[%c0_235, %c0_236] : memref<1x128xf32, #tpu.memory_space<vmem>>, vector<1x128xf32>
    %187 = vector.broadcast %186 : vector<1x128xf32> to vector<64x128xf32>
    %188 = arith.addf %185, %187 : vector<64x128xf32>
    %cst_237 = arith.constant dense<0.000000e+00> : vector<128xf32>
    %189 = vector.multi_reduction <add>, %188, %cst_237 [0] : vector<64x128xf32> to vector<128xf32>
    %190 = vector.shape_cast %189 : vector<128xf32> to vector<1x128xf32>
    %cst_238 = arith.constant 6.400000e+01 : f32
    %191 = vector.broadcast %cst_238 : f32 to vector<1x128xf32>
    %192 = arith.divf %190, %191 : vector<1x128xf32>
    %193 = vector.broadcast %192 : vector<1x128xf32> to vector<64x128xf32>
    %194 = arith.subf %188, %193 : vector<64x128xf32>
    %195 = arith.mulf %194, %194 : vector<64x128xf32>
    %cst_239 = arith.constant dense<0.000000e+00> : vector<128xf32>
    %196 = vector.multi_reduction <add>, %195, %cst_239 [0] : vector<64x128xf32> to vector<128xf32>
    %197 = vector.shape_cast %196 : vector<128xf32> to vector<1x128xf32>
    %cst_240 = arith.constant 0.0158730168 : f32
    %198 = vector.broadcast %cst_240 : f32 to vector<1x128xf32>
    %199 = arith.mulf %197, %198 : vector<1x128xf32>
    %cst_241 = arith.constant 9.99999974E-5 : f32
    %200 = vector.broadcast %cst_241 : f32 to vector<1x128xf32>
    %201 = arith.addf %199, %200 : vector<1x128xf32>
    %cst_242 = arith.constant 4.000000e+00 : f32
    %202 = vector.broadcast %cst_242 : f32 to vector<1x128xf32>
    %203 = arith.mulf %202, %201 : vector<1x128xf32>
    %204 = tpu.reciprocal %203 {approx = true} : vector<1x128xf32> -> vector<1x128xf32>
    %205 = vector.broadcast %204 : vector<1x128xf32> to vector<64x128xf32>
    %206 = arith.mulf %195, %205 : vector<64x128xf32>
    %cst_243 = arith.constant 5.000000e-01 : f32
    %207 = vector.broadcast %cst_243 : f32 to vector<64x128xf32>
    %208 = arith.addf %206, %207 : vector<64x128xf32>
    %209 = arith.negf %208 : vector<64x128xf32>
    %210 = math.exp %209 : vector<64x128xf32>
    %cst_244 = arith.constant 1.000000e+00 : f32
    %211 = vector.broadcast %cst_244 : f32 to vector<64x128xf32>
    %212 = arith.addf %211, %210 : vector<64x128xf32>
    %213 = arith.divf %211, %212 : vector<64x128xf32>
    %214 = arith.mulf %188, %213 : vector<64x128xf32>
    %c0_245 = arith.constant 0 : index
    %c1_246 = arith.constant 1 : index
    %c1_247 = arith.constant 1 : index
    %c0_248 = arith.constant 0 : index
    %c0_249 = arith.constant 0 : index
    %c0_250 = arith.constant 0 : index
    %215 = vector.load %arg1[%c0_245, %c1_246, %c1_247, %c0_248, %c0_249, %c0_250] : memref<1x2x2x9x9x4xf32, #tpu.memory_space<vmem>>, vector<1x1x1x8x8x4xf32>
    %216 = vector.shape_cast %215 : vector<1x1x1x8x8x4xf32> to vector<8x8x4xf32>
    %217 = vector.shape_cast %216 : vector<8x8x4xf32> to vector<64x4xf32>
    %218 = arith.truncf %217 : vector<64x4xf32> to vector<64x4xbf16>
    %c0_251 = arith.constant 0 : index
    %c0_252 = arith.constant 0 : index
    %219 = vector.load %arg6[%c0_251, %c0_252] : memref<4x128xbf16, #tpu.memory_space<vmem>>, vector<4x128xbf16>
    %cst_253 = arith.constant dense<0.000000e+00> : vector<64x128xf32>
    %220 = tpu.matmul %218, %219, %cst_253 {dimension_numbers = #tpu.dot_dimension_numbers<[1], [0], [0], [1], [0, 0, 1, 1], [], []>} : vector<64x4xbf16>, vector<4x128xbf16>, vector<64x128xf32> -> vector<64x128xf32>
    %c0_254 = arith.constant 0 : index
    %c0_255 = arith.constant 0 : index
    %221 = vector.load %arg7[%c0_254, %c0_255] : memref<1x128xf32, #tpu.memory_space<vmem>>, vector<1x128xf32>
    %222 = vector.broadcast %221 : vector<1x128xf32> to vector<64x128xf32>
    %223 = arith.addf %220, %222 : vector<64x128xf32>
    %224 = arith.addf %214, %223 : vector<64x128xf32>
    %cst_256 = arith.constant 0.000000e+00 : f32
    %225 = vector.broadcast %cst_256 : f32 to vector<64x128xf32>
    %226 = arith.maximumf %224, %225 : vector<64x128xf32>
    %c0_257 = arith.constant 0 : index
    %c0_258 = arith.constant 0 : index
    %c0_259 = arith.constant 0 : index
    %227 = vector.load %arg8[%c0_257, %c0_258, %c0_259] : memref<1x64x128xf32, #tpu.memory_space<vmem>>, vector<1x64x128xf32>
    %228 = vector.shape_cast %227 : vector<1x64x128xf32> to vector<64x128xf32>
    %229 = vector.shape_cast %226 : vector<64x128xf32> to vector<1x64x128xf32>
    tpu.vector_store %arg8[%c0_257, %c0_258, %c0_259], %229 {strides = array<i32>} : memref<1x64x128xf32, #tpu.memory_space<vmem>>, vector<1x64x128xf32>,
    return
  }
  func.func @transform_0(%arg0: i32) -> (i32, i32, i32, i32, i32, i32) {
    %c0_i32 = arith.constant 0 : i32
    %c0_i32_0 = arith.constant 0 : i32
    %c0_i32_1 = arith.constant 0 : i32
    %c0_i32_2 = arith.constant 0 : i32
    %c0_i32_3 = arith.constant 0 : i32
    %c0_i32_4 = arith.constant 0 : i32
    return %arg0, %c0_i32, %c0_i32_0, %c0_i32_1, %c0_i32_2, %c0_i32_3 : i32, i32, i32, i32, i32, i32
  }
  func.func @transform_1(%arg0: i32) -> (i32, i32, i32) {
    %c0_i32 = arith.constant 0 : i32
    %c0_i32_0 = arith.constant 0 : i32
    %c0_i32_1 = arith.constant 0 : i32
    %c0_i32_2 = arith.constant 0 : i32
    return %c0_i32, %c0_i32_0, %c0_i32_1 : i32, i32, i32
  }
  func.func @transform_2(%arg0: i32) -> (i32, i32) {
    %c0_i32 = arith.constant 0 : i32
    %c0_i32_0 = arith.constant 0 : i32
    %c0_i32_1 = arith.constant 0 : i32
    return %c0_i32, %c0_i32_0 : i32, i32
  }
  func.func @transform_3(%arg0: i32) -> (i32, i32, i32) {
    %c0_i32 = arith.constant 0 : i32
    %c0_i32_0 = arith.constant 0 : i32
    %c0_i32_1 = arith.constant 0 : i32
    %c0_i32_2 = arith.constant 0 : i32
    return %c0_i32, %c0_i32_0, %c0_i32_1 : i32, i32, i32
  }
  func.func @transform_4(%arg0: i32) -> (i32, i32) {
    %c0_i32 = arith.constant 0 : i32
    %c0_i32_0 = arith.constant 0 : i32
    %c0_i32_1 = arith.constant 0 : i32
    return %c0_i32, %c0_i32_0 : i32, i32
  }
  func.func @transform_5(%arg0: i32) -> (i32, i32) {
    %c0_i32 = arith.constant 0 : i32
    %c0_i32_0 = arith.constant 0 : i32
    %c0_i32_1 = arith.constant 0 : i32
    return %c0_i32, %c0_i32_0 : i32, i32
  }
  func.func @transform_6(%arg0: i32) -> (i32, i32) {
    %c0_i32 = arith.constant 0 : i32
    %c0_i32_0 = arith.constant 0 : i32
    %c0_i32_1 = arith.constant 0 : i32
    return %c0_i32, %c0_i32_0 : i32, i32
  }
  func.func @transform_7(%arg0: i32) -> (i32, i32, i32) {
    %c0_i32 = arith.constant 0 : i32
    %c0_i32_0 = arith.constant 0 : i32
    %c0_i32_1 = arith.constant 0 : i32
    return %arg0, %c0_i32, %c0_i32_0 : i32, i32, i32
  }
}

</mosaic_0001>

<bundles_post_ra>
// kernel: simam_basic_block_forward.1
= control target key start
LH: loop header
LB: loop body
LE: loop exit
PB: predicated region body
PF: predicated region fallthrough
CT: control target
= control target key end

     0   :  { %s4351_s24 = smov 0   ;;  %s5112_s0 = inlined_call_operand.vmem [shape: f32[2,2,2,9,9,4], index: 0, kind: input, shape index: {}]   ;;  %s5113_s1 = inlined_call_operand.vmem [shape: bf16[9,4,128], index: 1, kind: input, shape index: {}]   ;;  %s5114_s2 = inlined_call_operand.vmem [shape: f32[1,128], index: 2, kind: input, shape index: {}]   ;;  %s5115_s3 = inlined_call_operand.vmem [shape: bf16[9,128,128], index: 3, kind: input, shape index: {}]   ;;  %s5116_s4 = inlined_call_operand.vmem [shape: f32[1,128], index: 4, kind: input, shape index: {}]   ;;  %s5117_s5 = inlined_call_operand.vmem [shape: bf16[4,128], index: 5, kind: input, shape index: {}]   ;;  %s5118_s6 = inlined_call_operand.vmem [shape: f32[1,128], index: 6, kind: input, shape index: {}]   ;;  %s5119_s7 = inlined_call_operand.vmem [shape: f32[2,64,128], index: 7, kind: output, shape index: {}]  }
   0x1 LB: > { %s3240_s25 = sadd.s32 4294967295, %s4308_s24   ;;  %p3244_p0 = scmp.ge.s32.totalorder %s4308_s24, 1  ;;  %s4308_s24 = sphi %s4351_s24, %s17_s24  }
   0x2   : > { %p237_p1 = scmp.lt.s32.totalorder %s4308_s24, 3 }
   0x4   : > { %p238_p2 = pnand %p3244_p0, %p237_p1 }
   0x5   : > { %v308_v0 = vld [vmem:[%s5113_s1] sm:$0x3] (!%p238_p2)  ;;  %vm322_vm0 = vcmask (!%p238_p2), 1041408   ;;  %p269_p3 = scmp.lt.s32.totalorder (!%p238_p2), %s3240_s25, 1  ;;  %v3260_v2 = vld [vmem:[%s5113_s1 + $0x2] sm:$0x3] (!%p238_p2) }
   0x6   : > { %241 = sbr.rel (%p238_p2) target bundleno = 909 (0x38d), region = 48  ;;  %4176 = vmatprep.subr.msk.bf16.mxu0 (!%p238_p2), %vm322_vm0, %v308_v0  ;;  %v324_v1 = vsel (!%p238_p2), %vm322_vm0, %v308_v0, 0  ;;  %vm309_vm1 = vcmask (!%p238_p2), 31744   ;;  %v443_v12 = vsel (!%p238_p2), %vm322_vm0, %v3260_v2, 0  ;;  %v3265_v15 = vld [vmem:[%s5113_s1 + $0x4] sm:$0x3] (!%p238_p2) }
   0x7   : > { %3733 = vmatpush3.bf16.msra.mxu0 (!%p238_p2), %v324_v1  ;;  %v3278_v42 = vld [vmem:[%s5113_s1 + $0x6] sm:$0x3] (!%p238_p2)  ;;  %v561_v43 = vsel (!%p238_p2), %vm322_vm0, %v3265_v15, 0  ;;  %v3291_v45 = vld [vmem:[%s5113_s1 + $0x8] sm:$0x3] (!%p238_p2)  ;;  %v4201_v51 = vld [vmem:[%s5115_s3 + $0x90] sm:$0xff] (!%p238_p2)  }
   0x8   : > { %4177 = vmatprep.subr.msk.bf16.mxu0 (!%p238_p2), %vm322_vm0, %v3260_v2  ;;  %v4197_v44 = vld [vmem:[%s5115_s3 + $0x80] sm:$0xff] (!%p238_p2)   ;;  %v3304_v46 = vld [vmem:[%s5113_s1 + $0xa] sm:$0x3] (!%p238_p2)  ;;  %v680_v50 = vsel (!%p238_p2), %vm322_vm0, %v3278_v42, 0  ;;  %v799_v53 = vsel (!%p238_p2), %vm322_vm0, %v3291_v45, 0  ;;  %v4203_v56 = vld [vmem:[%s5115_s3 + $0x98] sm:$0xff] (!%p238_p2)  }
   0x9   : > { %3870 = vmatprep.subr.bf16.mxu1 (!%p238_p2), %v4197_v44  ;;  %v4199_v47 = vld [vmem:[%s5115_s3 + $0x88] sm:$0xff] (!%p238_p2)   ;;  %v917_v54 = vsel (!%p238_p2), %vm322_vm0, %v3304_v46, 0 }
   0xa   : > { %3871 = vmatpush3.bf16.msra.mxu1 (!%p238_p2), %v4197_v44 }
   0xb   : > { %3872 = vmatprep.subr.bf16.mxu1 (!%p238_p2), %v4199_v47 }
   0xd   : > { %s5121_s25 = smov (!%p269_p3, %s3240_s25), 1 }
   0xe   : > { %s4186_s30 = smul.u32 576, %s5121_s25  ;;  %3873 = vmatpush3.bf16.msra.mxu1 %v4199_v47  ;;  %s3573_s15 = sshll.u32 %s5121_s25, 6 }
   0xf   : > { %3874 = vmatprep.subr.bf16.mxu1 %v4201_v51  ;;  %s5089_s25 = scalar_lea.vmem %s5119_s7, %s3573_s15 }
  0x10   : > { %s4374_s10 = scalar_lea.vmem %s5112_s0, %s4186_s30 }
  0x11   : > { %v288_v3 = vld [vmem:[%s4374_s10] sm:$0xff]  ;;  %v4378_v4 = vld [vmem:[%s4374_s10 + $0x10] sm:$0xff] }
  0x12   : > { %v4381_v5 = vld [vmem:[%s4374_s10 + $0x20] sm:$0xff]  ;;  %v296_v6 = vpack.c.bf16 %v4378_v4, %v288_v3  ;;  %v4385_v7 = vld [vmem:[%s4374_s10 + $0x30] sm:$0xff]  ;;  %3875 = vmatpush3.bf16.msra.mxu1 %v4201_v51 }
  0x13   : > { %v4388_v8 = vld [vmem:[%s4374_s10 + $0x40] sm:$0xff]  ;;  %v4391_v9 = vld [vmem:[%s4374_s10 + $0x50] sm:$0xff]  ;;  %v1009_v10 = vpack.c.bf16 %v4381_v5, %v4378_v4  ;;  %v297_v11 = vpack.c.bf16 %v4385_v7, %v4381_v5  ;;  %3876 = vmatprep.subr.bf16.mxu1 %v4203_v56 }
  0x14   : > { %v298_v13 = vpack.c.bf16 %v4391_v9, %v4388_v8  ;;  %v4401_v14 = vld [vmem:[%s4374_s10 + $0x60] sm:$0xff]  ;;  %v1010_v16 = vpack.c.bf16 %v4388_v8, %v4385_v7  ;;  %3734 = vmatprep.mubr.msk.bf16.mxu0 %vm309_vm1, %v296_v6  ;;  %v4413_v18 = vld [vmem:[%s4374_s10 + $0xb0] sm:$0xff] }
  0x15   : > { %v4410_v17 = vld [vmem:[%s4374_s10 + $0xa0] sm:$0xff]  ;;  %v1011_v20 = vpack.c.bf16 %v4401_v14, %v4391_v9  ;;  %3735 = vmatmul.mubr.msk.bf16.vlgmr.msra.gmra.mrb[0].mxu0 %vm309_vm1, %v297_v11  ;;  %v4422_v21 = vld [vmem:[%s4374_s10 + $0xd0] sm:$0xff] }
  0x16   : > { %v4416_v19 = vld [vmem:[%s4374_s10 + $0xc0] sm:$0xff]  ;;  %v4428_v23 = vld [vmem:[%s4374_s10 + $0xf0] sm:$0xff]  ;;  %v1128_v24 = vpack.c.bf16 %v4413_v18, %v4410_v17  ;;  %3743 = vmatpush3.bf16.msra.mxu0 %v443_v12  ;;  %3738 = vmatprep.mubr.msk.bf16.mxu0 %vm309_vm1, %v298_v13 }
  0x17   : > { %v4425_v22 = vld [vmem:[%s4374_s10 + $0xe0] sm:$0xff]  ;;  %v4434_v25 = vld [vmem:[%s4374_s10 + $0x70] sm:$0xff]  ;;  %v1129_v28 = vpack.c.bf16 %v4422_v21, %v4416_v19  ;;  %4178 = vmatprep.subr.msk.bf16.mxu0 %vm322_vm0, %v3265_v15  ;;  %v417_v40 = vpack.c.bf16 %v4416_v19, %v4413_v18  ;;  %3877 = vmatpush3.bf16.msra.mxu1 %v4203_v56  ;;  %v4202_v19 = vld [vmem:[%s5115_s3 + $0x18] sm:$0xff]  }
  0x18   : > { %v3252_v26 = vld [vmem:[%s4374_s10 + $0x90] sm:$0xff]  ;;  %v1130_v29 = vpack.c.bf16 %v4428_v23, %v4425_v22  ;;  %v4446_v30 = vld [vmem:[%s4374_s10 + $0x21] sm:$0xff]  ;;  %v299_v37 = vpack.c.bf16 %v4434_v25, %v4401_v14  ;;  %v418_v41 = vpack.c.bf16 %v4425_v22, %v4422_v21 }
  0x19   : > { %v4438_v27 = vld [vmem:[%s4374_s10 + $0x11] sm:$0xff]  ;;  %v4452_v32 = vld [vmem:[%s4374_s10 + $0x41] sm:$0xff]  ;;  %v416_v39 = vpack.c.bf16 %v4410_v17, %v3252_v26 }
  0x1a   : > { %v4449_v31 = vld [vmem:[%s4374_s10 + $0x31] sm:$0xff]  ;;  %v4458_v34 = vld [vmem:[%s4374_s10 + $0x61] sm:$0xff]  ;;  %v1246_v35 = vpack.c.bf16 %v4446_v30, %v4438_v27 }
  0x1b   : > { %v4455_v33 = vld [vmem:[%s4374_s10 + $0x51] sm:$0xff]  ;;  %v1247_v36 = vpack.c.bf16 %v4452_v32, %v4449_v31  ;;  %v4494_v48 = vld [vmem:[%s4374_s10 + $0x100] sm:$0xff]  ;;  %v535_v57 = vpack.c.bf16 %v4449_v31, %v4446_v30  ;;  %v4198_v14 = vld [vmem:[%s5115_s3 + $0x8] sm:$0xff]  }
  0x1c   : > { %v1248_v38 = vpack.c.bf16 %v4458_v34, %v4455_v33  ;;  %v526_v49 = vld [vmem:[%s4374_s10 + $0x1] sm:$0xff]  ;;  %v419_v52 = vpack.c.bf16 %v4494_v48, %v4428_v23  ;;  %v536_v58 = vpack.c.bf16 %v4455_v33, %v4452_v32  ;;  %v4517_v59 = vld [vmem:[%s4374_s10 + $0x71] sm:$0xff]  ;;  %v3348_v32 = vld [vmem:[%s5114_s2] ss:$0 sm:$0xff] }
  0x1d   : > { %3739 = vmatmul.mubr.msk.bf16.gmra.mrb[4].mxu0 %vm309_vm1, %v299_v37  ;;  %v534_v55 = vpack.c.bf16 %v4438_v27, %v526_v49  ;;  %v3270_v60 = vld [vmem:[%s4374_s10 + $0x120] sm:$0xff]  ;;  %v3271_v61 = vld [vmem:[%s4374_s10 + $0x130] sm:$0xff]  ;;  %v537_v62 = vpack.c.bf16 %v4517_v59, %v4458_v34  ;;  %v4206_v23 = vld [vmem:[%s5115_s3 + $0x28] sm:$0xff]  }
  0x1e   : > { %3744 = vmatprep.mubr.msk.bf16.mxu0 %vm309_vm1, %v416_v39  ;;  %v653_v63 = vpack.c.bf16 %v3271_v61, %v3270_v60  ;;  %v3272_v0 = vld [vmem:[%s4374_s10 + $0x140] sm:$0xff]  ;;  %v3273_v1 = vld [vmem:[%s4374_s10 + $0x150] sm:$0xff] }
  0x1f   : > { %v3274_v2 = vld [vmem:[%s4374_s10 + $0x160] sm:$0xff]  ;;  %v3275_v3 = vld [vmem:[%s4374_s10 + $0x170] sm:$0xff]  ;;  %v654_v6 = vpack.c.bf16 %v3273_v1, %v3272_v0 }
  0x20   : > { %v655_v11 = vpack.c.bf16 %v3275_v3, %v3274_v2  ;;  %v3276_v12 = vld [vmem:[%s4374_s10 + $0x180] sm:$0xff]  ;;  %v3277_v13 = vld [vmem:[%s4374_s10 + $0x190] sm:$0xff] }
  0x21   : > { %v3283_v15 = vld [vmem:[%s4374_s10 + $0x1b0] sm:$0xff]  ;;  %v3284_v26 = vld [vmem:[%s4374_s10 + $0x1c0] sm:$0xff]  ;;  %v656_v37 = vpack.c.bf16 %v3277_v13, %v3276_v12 }
  0x22   : > { %v772_v39 = vpack.c.bf16 %v3284_v26, %v3283_v15  ;;  %v3289_v47 = vld [vmem:[%s4374_s10 + $0x210] sm:$0xff]  ;;  %v3290_v49 = vld [vmem:[%s4374_s10 + $0x220] sm:$0xff] }
  0x23   : > { %v3297_v51 = vld [vmem:[%s4374_s10 + $0x131] sm:$0xff]  ;;  %v3316_v4 = vld [vmem:[%s4374_s10 + $0x80] sm:$0xff] }
  0x24   : > { %v3299_v56 = vld [vmem:[%s4374_s10 + $0x151] sm:$0xff]  ;;  %v1012_v5 = vpack.c.bf16 %v3316_v4, %v4434_v25  ;;  %v4196_v8 = vld [vmem:[%s5115_s3] sm:$0xff]  }
  0x25   : > { %3745 = vmatmul.mubr.msk.bf16.vlgmr.msra.gmra.mrb[0].mxu0 %vm309_vm1, %v417_v40  ;;  %v3285_v40 = vld [vmem:[%s4374_s10 + $0x1d0] sm:$0xff]  ;;  %v4204_v21 = vld [vmem:[%s5115_s3 + $0x20] sm:$0xff]  }
  0x26   : > { %3753 = vmatpush3.bf16.msra.mxu0 %v561_v43  ;;  %3748 = vmatprep.mubr.msk.bf16.mxu0 %vm309_vm1, %v418_v41  ;;  %v3286_v41 = vld [vmem:[%s4374_s10 + $0x1e0] sm:$0xff]  ;;  %v3303_v0 = vld [vmem:[%s4374_s10 + $0x191] sm:$0xff] }
  0x27   : > { %4179 = vmatprep.subr.msk.bf16.mxu0 %vm322_vm0, %v3278_v42  ;;  %v3287_v42 = vld [vmem:[%s4374_s10 + $0x1f0] sm:$0xff]  ;;  %v3288_v43 = vld [vmem:[%s4374_s10 + $0x200] sm:$0xff]  ;;  %v773_v44 = vpack.c.bf16 %v3286_v41, %v3285_v40 }
  0x28   : > { %v3343_v3 = vld [vmem:[%s5113_s1 + $0x10] sm:$0x3]  ;;  %v4205_v22 = vld [vmem:[%s5115_s3 + $0xa0] sm:$0xff]  }
  0x29   : > { %v1273_v7 = vsel %vm322_vm0, %v3343_v3, 0  ;;  %v3329_v9 = vld [vmem:[%s4374_s10 + $0x110] sm:$0xff]  ;;  %3878 = vmatprep.subr.bf16.mxu1 %v4205_v22  ;;  %v4681_v30 = vld [vmem:[%s5115_s3 + $0x40] sm:$0xff]  }
  0x2a   : > { %v4200_v17 = vld [vmem:[%s5115_s3 + $0x10] sm:$0xff]   ;;  %3879 = vmatpush3.bf16.msra.mxu1 %v4205_v22  ;;  %v4686_v31 = vld [vmem:[%s5115_s3 + $0xc0] sm:$0xff]  }
  0x2b   : > { %v4208_v25 = vld [vmem:[%s5115_s3 + $0x30] sm:$0xff]  }
  0x2c   : > { %v4209_v27 = vld [vmem:[%s5115_s3 + $0xb0] sm:$0xff]  }
  0x2d   : > { %3749 = vmatmul.mubr.msk.bf16.gmra.mrb[4].mxu0 %vm309_vm1, %v419_v52  ;;  %v775_v52 = vpack.c.bf16 %v3290_v49, %v3289_v47 }
  0x2e   : > { %3754 = vmatprep.mubr.msk.bf16.mxu0 %vm309_vm1, %v534_v55  ;;  %v3298_v55 = vld [vmem:[%s4374_s10 + $0x141] sm:$0xff] }
  0x35   : > { %3755 = vmatmul.mubr.msk.bf16.vlgmr.msra.gmra.mrb[0].mxu0 %vm309_vm1, %v535_v57  ;;  %v3300_v57 = vld [vmem:[%s4374_s10 + $0x161] sm:$0xff] }
  0x36   : > { %3763 = vmatpush3.bf16.msra.mxu0 %v680_v50  ;;  %3758 = vmatprep.mubr.msk.bf16.mxu0 %vm309_vm1, %v536_v58  ;;  %v3296_v50 = vld [vmem:[%s4374_s10 + $0x121] sm:$0xff]  ;;  %v891_v58 = vpack.c.bf16 %v3299_v56, %v3298_v55 }
  0x37   : > { %4180 = vmatprep.subr.msk.bf16.mxu0 %vm322_vm0, %v3291_v45  ;;  %v774_v45 = vpack.c.bf16 %v3288_v43, %v3287_v42 }
  0x3d   : > { %3759 = vmatmul.mubr.msk.bf16.gmra.mrb[4].mxu0 %vm309_vm1, %v537_v62  ;;  %v3330_v62 = vld [vmem:[%s5113_s1 + $0xe] sm:$0x3] }
  0x3e   : > { %3764 = vmatprep.mubr.msk.bf16.mxu0 %vm309_vm1, %v653_v63  ;;  %v3302_v63 = vld [vmem:[%s4374_s10 + $0x181] sm:$0xff]  ;;  %v1155_v2 = vsel %vm322_vm0, %v3330_v62, 0 }
  0x3f   : > { %v893_v1 = vpack.c.bf16 %v3303_v0, %v3302_v63 }
  0x45   : > { %3765 = vmatmul.mubr.msk.bf16.vlgmr.msra.gmra.mrb[0].mxu0 %vm309_vm1, %v654_v6 }
  0x46   : > { %3773 = vmatpush3.bf16.msra.mxu0 %v799_v53  ;;  %3768 = vmatprep.mubr.msk.bf16.mxu0 %vm309_vm1, %v655_v11  ;;  %v890_v53 = vpack.c.bf16 %v3297_v51, %v3296_v50 }
  0x47   : > { %4181 = vmatprep.subr.msk.bf16.mxu0 %vm322_vm0, %v3304_v46  ;;  %v3317_v46 = vld [vmem:[%s5113_s1 + $0xc] sm:$0x3] }
  0x48   : > { %v1036_v61 = vsel %vm322_vm0, %v3317_v46, 0 }
  0x4d   : > { %3769 = vmatmul.mubr.msk.bf16.gmra.mrb[4].mxu0 %vm309_vm1, %v656_v37 }
  0x4e   : > { %3774 = vmatprep.mubr.msk.bf16.mxu0 %vm309_vm1, %v772_v39 }
  0x55   : > { %3775 = vmatmul.mubr.msk.bf16.vlgmr.msra.gmra.mrb[0].mxu0 %vm309_vm1, %v773_v44 }
  0x56   : > { %3783 = vmatpush3.bf16.msra.mxu0 %v917_v54  ;;  %3778 = vmatprep.mubr.msk.bf16.mxu0 %vm309_vm1, %v774_v45  ;;  %v3301_v54 = vld [vmem:[%s4374_s10 + $0x171] sm:$0xff] }
  0x57   : > { %4182 = vmatprep.subr.msk.bf16.mxu0 %vm322_vm0, %v3317_v46  ;;  %v892_v60 = vpack.c.bf16 %v3301_v54, %v3300_v57 }
  0x5d   : > { %3779 = vmatmul.mubr.msk.bf16.gmra.mrb[4].mxu0 %vm309_vm1, %v775_v52 }
  0x5e   : > { %3784 = vmatprep.mubr.msk.bf16.mxu0 %vm309_vm1, %v890_v53 }
  0x65   : > { %3785 = vmatmul.mubr.msk.bf16.vlgmr.msra.gmra.mrb[0].mxu0 %vm309_vm1, %v891_v58 }
  0x66   : > { %3793 = vmatpush3.bf16.msra.mxu0 %v1036_v61  ;;  %3788 = vmatprep.mubr.msk.bf16.mxu0 %vm309_vm1, %v892_v60 }
  0x67   : > { %4183 = vmatprep.subr.msk.bf16.mxu0 %vm322_vm0, %v3330_v62 }
  0x6d   : > { %3789 = vmatmul.mubr.msk.bf16.gmra.mrb[4].mxu0 %vm309_vm1, %v893_v1 }
  0x6e   : > { %3794 = vmatprep.mubr.msk.bf16.mxu0 %vm309_vm1, %v1009_v10  ;;  %v1131_v10 = vpack.c.bf16 %v3329_v9, %v4494_v48 }
  0x75   : > { %3795 = vmatmul.mubr.msk.bf16.vlgmr.msra.gmra.mrb[0].mxu0 %vm309_vm1, %v1010_v16  ;;  %v3342_v16 = vld [vmem:[%s4374_s10 + $0x81] sm:$0xff] }
  0x76   : > { %3803 = vmatpush3.bf16.msra.mxu0 %v1155_v2  ;;  %3798 = vmatprep.mubr.msk.bf16.mxu0 %vm309_vm1, %v1011_v20  ;;  %v1249_v18 = vpack.c.bf16 %v3342_v16, %v4517_v59  ;;  %v4310_v20 = vmov 0.0   ;;  %v4217_v16 = vld [vmem:[%s5115_s3 + $0xd0] sm:$0xff]  }
  0x77   : > { %4184 = vmatprep.subr.msk.bf16.mxu0 %vm322_vm0, %v3343_v3  ;;  %1393 = vst [vmem:[#allocation3 + $0x30] sm:$0xff] %v4310_v20  ;;  %1394 = vst [vmem:[#allocation3 + $0x38] sm:$0x3] %v4310_v20 }
  0x78   : > { %1387 = vst [vmem:[#allocation3] sm:$0xff] %v4310_v20  ;;  %1388 = vst [vmem:[#allocation3 + $0x8] sm:$0x3] %v4310_v20 }
  0x79   : > { %1389 = vst [vmem:[#allocation3 + $0x10] sm:$0xff] %v4310_v20  ;;  %1390 = vst [vmem:[#allocation3 + $0x18] sm:$0x3] %v4310_v20 }
  0x7a   : > { %1391 = vst [vmem:[#allocation3 + $0x20] sm:$0xff] %v4310_v20  ;;  %1392 = vst [vmem:[#allocation3 + $0x28] sm:$0x3] %v4310_v20 }
  0x7b   : > { %1395 = vst [vmem:[#allocation3 + $0x40] sm:$0xff] %v4310_v20  ;;  %1396 = vst [vmem:[#allocation3 + $0x48] sm:$0x3] %v4310_v20 }
  0x7c   : > { %1397 = vst [vmem:[#allocation3 + $0x50] sm:$0xff] %v4310_v20  ;;  %1398 = vst [vmem:[#allocation3 + $0x58] sm:$0x3] %v4310_v20 }
  0x7d   : > { %3799 = vmatmul.mubr.msk.bf16.gmra.mrb[4].mxu0 %vm309_vm1, %v1012_v5  ;;  %1399 = vst [vmem:[#allocation3 + $0x60] sm:$0xff] %v4310_v20  ;;  %1400 = vst [vmem:[#allocation3 + $0x68] sm:$0x3] %v4310_v20  ;;  %v4214_v5 = vld [vmem:[%s5115_s3 + $0x48] sm:$0xff]  }
  0x7e   : > { %3804 = vmatprep.mubr.msk.bf16.mxu0 %vm309_vm1, %v1128_v24  ;;  %1401 = vst [vmem:[#allocation3 + $0x70] sm:$0xff] %v4310_v20  ;;  %1402 = vst [vmem:[#allocation3 + $0x78] sm:$0x3] %v4310_v20  ;;  %v4207_v24 = vld [vmem:[%s5115_s3 + $0xa8] sm:$0xff]  }
  0x7f   : > { %1403 = vst [vmem:[#allocation3 + $0x80] sm:$0xff] %v4310_v20  ;;  %1404 = vst [vmem:[#allocation3 + $0x88] sm:$0x3] %v4310_v20  ;;  %3880 = vmatprep.subr.bf16.mxu1 %v4207_v24  ;;  %v1755_v49 = vld [vmem:[#allocation3 + $0x2] sm:$0xff] }
  0x80   : > { %1405 = vst [vmem:[#allocation3 + $0x90] sm:$0xff] %v4310_v20  ;;  %1406 = vst [vmem:[#allocation3 + $0x98] sm:$0x3] %v4310_v20  ;;  %3881 = vmatpush3.bf16.msra.mxu1 %v4207_v24  ;;  %v1589_v24 = vld [vmem:[#allocation3 + $0x1] sm:$0xff] }
  0x81   : > { %3882 = vmatprep.subr.bf16.mxu1 %v4209_v27 }
  0x84   : > { %3883 = vmatpush3.bf16.msra.mxu1 %v4209_v27 }
  0x85   : > { %3805 = vmatmul.mubr.msk.bf16.vlgmr.msra.gmra.mrb[0].mxu0 %vm309_vm1, %v1129_v28  ;;  %v4210_v28 = vld [vmem:[%s5115_s3 + $0x38] sm:$0xff]  }
  0x86   : > { %3813 = vmatpush3.bf16.msra.mxu0 %v1273_v7  ;;  %3808 = vmatprep.mubr.msk.bf16.mxu0 %vm309_vm1, %v1130_v29  ;;  %v4211_v29 = vld [vmem:[%s5115_s3 + $0xb8] sm:$0xff]   ;;  %v4215_v7 = vld [vmem:[%s5115_s3 + $0xc8] sm:$0xff]  }
  0x87   : > { %3822 = vmatprep.subr.bf16.mxu0 %v4196_v8  ;;  %3884 = vmatprep.subr.bf16.mxu1 %v4211_v29 }
  0x88   : > { %3885 = vmatpush3.bf16.msra.mxu1 %v4211_v29 }
  0x89   : > { %3894 = vmatprep.subr.bf16.mxu1 %v4686_v31 }
  0x8d   : > { %3809 = vmatmul.mubr.msk.bf16.gmra.mrb[4].mxu0 %vm309_vm1, %v1131_v10 }
  0x8e   : > { %3814 = vmatprep.mubr.msk.bf16.mxu0 %vm309_vm1, %v1246_v35 }
  0x95   : > { %3815 = vmatmul.mubr.msk.bf16.vlgmr.msra.gmra.mrb[0].mxu0 %vm309_vm1, %v1247_v36 }
  0x96   : > { %3818 = vmatprep.mubr.msk.bf16.mxu0 %vm309_vm1, %v1248_v38  ;;  %3823 = vmatpush3.bf16.msra.mxu0 %v4196_v8 }
  0x97   : > { %3824 = vmatprep.subr.bf16.mxu0 %v4198_v14 }
  0x9a   : > { %3825 = vmatpush3.bf16.msra.mxu0 %v4198_v14  ;;  %v4216_v14 = vld [vmem:[%s5115_s3 + $0x50] sm:$0xff]  }
  0x9b   : > { %3826 = vmatprep.subr.bf16.mxu0 %v4200_v17 }
  0x9d   : > { %3819 = vmatmul.mubr.msk.bf16.gmra.mrb[4].mxu0 %vm309_vm1, %v1249_v18 }
  0x9e   : > { %3827 = vmatpush3.bf16.msra.mxu0 %v4200_v17 }
  0x9f   : > { %3828 = vmatprep.subr.bf16.mxu0 %v4202_v19 }
  0xa2   : > { %3829 = vmatpush3.bf16.msra.mxu0 %v4202_v19 }
  0xa3   : > { %3830 = vmatprep.subr.bf16.mxu0 %v4204_v21 }
  0xa6   : > { %3831 = vmatpush3.bf16.msra.mxu0 %v4204_v21 }
  0xa7   : > { %3832 = vmatprep.subr.bf16.mxu0 %v4206_v23 }
  0xaa   : > { %3833 = vmatpush3.bf16.msra.mxu0 %v4206_v23 }
  0xab   : > { %3834 = vmatprep.subr.bf16.mxu0 %v4208_v25 }
  0xae   : > { %3835 = vmatpush3.bf16.msra.mxu0 %v4208_v25 }
  0xaf   : > { %3836 = vmatprep.subr.bf16.mxu0 %v4210_v28 }
  0xb2   : > { %3837 = vmatpush3.bf16.msra.mxu0 %v4210_v28 }
  0xb3   : > { %3846 = vmatprep.subr.bf16.mxu0 %v4681_v30 }
 0x168   : > { %v3816_v33 = vpop.f32.mrb[0].mxu0 }
 0x169   : > { %v1373_v34 = vadd.f32 %v3816_v33, %v3348_v32  ;;  %v1309_v35 = vpop.f32.mrb[1].mxu0 }
 0x16a   : > { %v1371_v36 = vadd.f32 %v3348_v32, %v1309_v35  ;;  %v3817_v38 = vpop.f32.mrb[2].mxu0 }
 0x16b   : > { %v4693_v48 = vmax.f32 %v1373_v34, 0.0  ;;  %v1374_v59 = vadd.f32 %v3817_v38, %v3348_v32  ;;  %v1312_v6 = vpop.f32.mrb[3].mxu0  ;;  %v4221_v38 = vld [vmem:[%s5115_s3 + $0xe0] sm:$0xff]  }
 0x16c   : > { %v4695_v11 = vmax.f32 %v1371_v36, 0.0  ;;  %v1372_v12 = vadd.f32 %v3348_v32, %v1312_v6  ;;  %v4220_v36 = vld [vmem:[%s5115_s3 + $0x60] sm:$0xff]   ;;  %v4223_v6 = vld [vmem:[%s5115_s3 + $0xe8] sm:$0xff]  }
 0x16d   : > { %1410 = vst [vmem:[#allocation3 + $0x31] sm:$0xff] %v4693_v48  ;;  %v4698_v13 = vmax.f32 %v1374_v59, 0.0  ;;  %v4222_v59 = vld [vmem:[%s5115_s3 + $0x68] sm:$0xff]  }
 0x16e   : > { %1408 = vst [vmem:[#allocation3 + $0x11] sm:$0xff] %v4695_v11  ;;  %v4701_v15 = vmax.f32 %v1372_v12, 0.0  ;;  %v1597_v34 = vpack.c.bf16 %v4695_v11, %v1589_v24  ;;  %v4224_v12 = vld [vmem:[%s5115_s3 + $0x70] sm:$0xff]  }
 0x16f   : > { %1411 = vst [vmem:[#allocation3 + $0x41] sm:$0xff] %v4698_v13  ;;  %v2096_v26 = vpack.c.bf16 %v4698_v13, %v4693_v48  ;;  %v3560_v24 = vld [vmem:[%s4374_s10 + $0x1d0] sm:$0xff] }
 0x170   : > { %1409 = vst [vmem:[#allocation3 + $0x21] sm:$0xff] %v4701_v15  ;;  %v3820_v37 = vpop.f32.mrb[4].mxu0  ;;  %v4709_v39 = vpack.c.bf16 %v4693_v48, %v4701_v15  ;;  %v2095_v40 = vpack.c.bf16 %v4701_v15, %v4695_v11  ;;  %v4235_v11 = vld [vmem:[%s5115_s3 + $0x138] sm:$0xff]   ;;  %v4236_v15 = vld [vmem:[%s5115_s3 + $0x140] sm:$0xff]  }
 0x171   : > { %v1377_v41 = vadd.f32 %v3820_v37, %v3348_v32  ;;  %v1325_v42 = vpop.f32.mrb[5].mxu0  ;;  %v4225_v37 = vld [vmem:[%s5115_s3 + $0xf0] sm:$0xff]   ;;  %v4240_v48 = vld [vmem:[%s5115_s3 + $0x160] sm:$0xff]  }
 0x172   : > { %v1375_v43 = vadd.f32 %v3348_v32, %v1325_v42  ;;  %v3821_v44 = vpop.f32.mrb[6].mxu0  ;;  %v4227_v42 = vld [vmem:[%s5115_s3 + $0xf8] sm:$0xff]  }
 0x173   : > { %v4713_v45 = vmax.f32 %v1377_v41, 0.0  ;;  %v1378_v46 = vadd.f32 %v3821_v44, %v3348_v32  ;;  %v1328_v47 = vpop.f32.mrb[7].mxu0  ;;  %v4226_v41 = vld [vmem:[%s5115_s3 + $0x78] sm:$0xff]  }
 0x174   : > { %v4715_v50 = vmax.f32 %v1375_v43, 0.0  ;;  %v1376_v51 = vadd.f32 %v3348_v32, %v1328_v47  ;;  %v4727_v58 = vld [vmem:[#allocation3 + $0x32] sm:$0xff]  ;;  %v4228_v43 = vld [vmem:[%s5115_s3 + $0x100] sm:$0xff]   ;;  %v4229_v47 = vld [vmem:[%s5115_s3 + $0x108] sm:$0xff]  }
 0x175   : > { %1414 = vst [vmem:[#allocation3 + $0x71] sm:$0xff] %v4713_v45  ;;  %v4718_v52 = vmax.f32 %v1378_v46, 0.0  ;;  %v1425_v53 = vld [vmem:[#allocation3 + $0x10] sm:$0xff]  ;;  %v4219_v32 = vld [vmem:[%s5115_s3 + $0xd8] sm:$0xff]  }
 0x176   : > { %v4720_v55 = vld [vmem:[#allocation3 + $0x12] sm:$0xff]  ;;  %1412 = vst [vmem:[#allocation3 + $0x51] sm:$0xff] %v4715_v50  ;;  %v4723_v56 = vmax.f32 %v1376_v51, 0.0  ;;  %v1432_v57 = vpack.c.bf16 %v1425_v53, %v4310_v20  ;;  %v4729_v60 = vld [vmem:[#allocation3 + $0x42] sm:$0xff]  ;;  %v4733_v61 = vpack.c.bf16 %v4715_v50, %v4698_v13 }
 0x177   : > { %v1763_v54 = vpack.c.bf16 %v4720_v55, %v1755_v49  ;;  %1415 = vst [vmem:[#allocation3 + $0x81] sm:$0xff] %v4718_v52  ;;  %v1426_v62 = vld [vmem:[#allocation3 + $0x20] sm:$0xff]  ;;  %v4736_v63 = vld [vmem:[#allocation3 + $0x30] sm:$0xff]  ;;  %v2098_v1 = vpack.c.bf16 %v4718_v52, %v4713_v45  ;;  %v2262_v2 = vpack.c.bf16 %v4729_v60, %v4727_v58  ;;  %v4241_v13 = vld [vmem:[%s5115_s3 + $0x168] sm:$0xff]  }
 0x178   : > { %v4738_v0 = vld [vmem:[#allocation3 + $0x22] sm:$0xff]  ;;  %1413 = vst [vmem:[#allocation3 + $0x61] sm:$0xff] %v4723_v56  ;;  %3838 = vmatprep.mubr.bf16.mxu0 %v1432_v57  ;;  %v4746_v3 = vpack.c.bf16 %v4736_v63, %v1426_v62  ;;  %v4760_v8 = vpack.c.bf16 %v4713_v45, %v4723_v56  ;;  %v2097_v9 = vpack.c.bf16 %v4723_v56, %v4715_v50  ;;  %v4230_v51 = vld [vmem:[%s5115_s3 + $0x110] sm:$0xff]   ;;  %v4231_v57 = vld [vmem:[%s5115_s3 + $0x118] sm:$0xff]  }
 0x179   : > { %3886 = vmatprep.mubr.bf16.mxu1 %v1763_v54  ;;  %v4750_v4 = vpack.c.bf16 %v4727_v58, %v4738_v0  ;;  %v2261_v10 = vpack.c.bf16 %v4738_v0, %v4720_v55  ;;  %v4776_v17 = vld [vmem:[#allocation3 + $0x40] sm:$0xff]  ;;  %v1929_v35 = vpack.c.bf16 %v1426_v62, %v1425_v53  ;;  %v4233_v62 = vld [vmem:[%s5115_s3 + $0x128] sm:$0xff]   ;;  %v4243_v45 = vld [vmem:[%s5115_s3 + $0x178] sm:$0xff]  }
 0x17a   : > { %3839 = vmatmul.mubr.bf16.vlgmr.msra.gmra.mrb[8].mxu0 %v4746_v3  ;;  %v1930_v44 = vpack.c.bf16 %v4776_v17, %v4736_v63  ;;  %v4232_v54 = vld [vmem:[%s5115_s3 + $0x120] sm:$0xff]   ;;  %v4234_v63 = vld [vmem:[%s5115_s3 + $0x130] sm:$0xff]   ;;  %v4245_v55 = vld [vmem:[%s5115_s3 + $0x188] sm:$0xff]  }
 0x17b   : > { %3887 = vmatmul.mubr.bf16.vlgmr.msra.gmra.mrb[0].mxu1 %v4750_v4  ;;  %3847 = vmatpush3.bf16.msra.mxu0 %v4681_v30  ;;  %v4244_v50 = vld [vmem:[%s5115_s3 + $0x180] sm:$0xff]   ;;  %v4246_v56 = vld [vmem:[%s5115_s3 + $0x190] sm:$0xff]   ;;  %v4247_v58 = vld [vmem:[%s5115_s3 + $0x198] sm:$0xff]  }
 0x17c   : > { %3895 = vmatpush3.bf16.msra.mxu1 %v4686_v31  ;;  %3848 = vmatprep.subr.bf16.mxu0 %v4214_v5  ;;  %v4790_v23 = vld [vmem:[#allocation3 + $0x70] sm:$0xff]  ;;  %v4218_v31 = vld [vmem:[%s5115_s3 + $0x58] sm:$0xff]  }
 0x17d   : > { %3896 = vmatprep.subr.bf16.mxu1 %v4215_v7  ;;  %v4778_v18 = vld [vmem:[#allocation3 + $0x50] sm:$0xff] }
 0x17e   : > { %v4780_v19 = vld [vmem:[#allocation3 + $0x52] sm:$0xff]  ;;  %v4784_v21 = vpack.c.bf16 %v4778_v18, %v4776_v17  ;;  %v4851_v49 = vld [vmem:[#allocation3 + $0x80] sm:$0xff] }
 0x17f   : > { %v4788_v22 = vpack.c.bf16 %v4780_v19, %v4729_v60  ;;  %3849 = vmatpush3.bf16.msra.mxu0 %v4214_v5  ;;  %v1430_v25 = vld [vmem:[#allocation3 + $0x60] sm:$0xff]  ;;  %v4794_v28 = vld [vmem:[#allocation3 + $0x72] sm:$0xff]  ;;  %v1932_v53 = vpack.c.bf16 %v4851_v49, %v4790_v23 }
 0x180   : > { %3897 = vmatpush3.bf16.msra.mxu1 %v4215_v7  ;;  %v4792_v27 = vld [vmem:[#allocation3 + $0x62] sm:$0xff]  ;;  %3842 = vmatprep.mubr.bf16.mxu0 %v4784_v21  ;;  %v4799_v29 = vpack.c.bf16 %v4790_v23, %v1430_v25  ;;  %v1931_v46 = vpack.c.bf16 %v1430_v25, %v4778_v18  ;;  %v4238_v5 = vld [vmem:[%s5115_s3 + $0x150] sm:$0xff]   ;;  %v4239_v7 = vld [vmem:[%s5115_s3 + $0x158] sm:$0xff]  }
 0x181   : > { %3890 = vmatprep.mubr.bf16.mxu1 %v4788_v22  ;;  %v4803_v30 = vpack.c.bf16 %v4794_v28, %v4792_v27  ;;  %3850 = vmatprep.subr.bf16.mxu0 %v4216_v14  ;;  %v2263_v33 = vpack.c.bf16 %v4792_v27, %v4780_v19  ;;  %v4928_v0 = vld [vmem:[#allocation3 + $0x82] sm:$0xff]  ;;  %v3558_v17 = vld [vmem:[%s4374_s10 + $0x1b0] sm:$0xff] }
 0x182   : > { %3898 = vmatprep.subr.bf16.mxu1 %v4217_v16  ;;  %3843 = vmatmul.mubr.bf16.gmra.mrb[12].mxu0 %v4799_v29  ;;  %v4248_v60 = vld [vmem:[%s5115_s3 + $0x1a0] sm:$0xff]   ;;  %v3562_v27 = vld [vmem:[%s4374_s10 + $0x1f0] sm:$0xff] }
 0x183   : > { %3891 = vmatmul.mubr.bf16.gmra.mrb[4].mxu1 %v4803_v30  ;;  %3851 = vmatpush3.bf16.msra.mxu0 %v4216_v14  ;;  %v4253_v14 = vld [vmem:[%s5115_s3 + $0x1c8] sm:$0xff]   ;;  %v3559_v18 = vld [vmem:[%s4374_s10 + $0x1c0] sm:$0xff] }
 0x184   : > { %3899 = vmatpush3.bf16.msra.mxu1 %v4217_v16  ;;  %3862 = vmatprep.mubr.bf16.mxu0 %v1597_v34  ;;  %v3073_v16 = vld [vmem:[%s5117_s5] sm:$0x3]  ;;  %v3069_v23 = vpack.c.bf16 %v3559_v18, %v3558_v17  ;;  %v3564_v34 = vld [vmem:[%s4374_s10 + $0x210] sm:$0xff] }
 0x185   : > { %3910 = vmatprep.mubr.bf16.mxu1 %v1929_v35  ;;  %3852 = vmatprep.subr.bf16.mxu0 %v4218_v31  ;;  %v3094_v19 = vsel %vm322_vm0, %v3073_v16, 0  ;;  %v3561_v25 = vld [vmem:[%s4374_s10 + $0x1e0] sm:$0xff] }
 0x186   : > { %3900 = vmatprep.subr.bf16.mxu1 %v4219_v32  ;;  %v3565_v35 = vld [vmem:[%s4374_s10 + $0x220] sm:$0xff] }
 0x187   : > { %3853 = vmatpush3.bf16.msra.mxu0 %v4218_v31  ;;  %v3563_v31 = vld [vmem:[%s4374_s10 + $0x200] sm:$0xff] }
 0x188   : > { %3901 = vmatpush3.bf16.msra.mxu1 %v4219_v32  ;;  %3854 = vmatprep.subr.bf16.mxu0 %v4220_v36  ;;  %v3071_v32 = vpack.c.bf16 %v3563_v31, %v3562_v27 }
 0x189   : > { %3902 = vmatprep.subr.bf16.mxu1 %v4221_v38 }
 0x18b   : > { %3855 = vmatpush3.bf16.msra.mxu0 %v4220_v36  ;;  %v3072_v36 = vpack.c.bf16 %v3565_v35, %v3564_v34 }
 0x18c   : > { %3903 = vmatpush3.bf16.msra.mxu1 %v4221_v38  ;;  %3856 = vmatprep.subr.bf16.mxu0 %v4222_v59  ;;  %v4256_v38 = vld [vmem:[%s5115_s3 + $0x1e0] sm:$0xff]  }
 0x18d   : > { %3904 = vmatprep.subr.bf16.mxu1 %v4223_v6 }
 0x18f   : > { %3857 = vmatpush3.bf16.msra.mxu0 %v4222_v59  ;;  %v4258_v59 = vld [vmem:[%s5115_s3 + $0x1f0] sm:$0xff]  }
 0x190   : > { %3905 = vmatpush3.bf16.msra.mxu1 %v4223_v6  ;;  %3858 = vmatprep.subr.bf16.mxu0 %v4224_v12  ;;  %v4260_v6 = vld [vmem:[%s5115_s3 + $0x200] sm:$0xff]  }
 0x191   : > { %3906 = vmatprep.subr.bf16.mxu1 %v4225_v37 }
 0x193   : > { %3859 = vmatpush3.bf16.msra.mxu0 %v4224_v12  ;;  %v4261_v12 = vld [vmem:[%s5115_s3 + $0x208] sm:$0xff]  }
 0x194   : > { %3907 = vmatpush3.bf16.msra.mxu1 %v4225_v37  ;;  %3860 = vmatprep.subr.bf16.mxu0 %v4226_v41  ;;  %v4262_v37 = vld [vmem:[%s5115_s3 + $0x210] sm:$0xff]  }
 0x195   : > { %3908 = vmatprep.subr.bf16.mxu1 %v4227_v42 }
 0x197   : > { %3861 = vmatpush3.bf16.msra.mxu0 %v4226_v41  ;;  %v2593_v41 = vld [vmem:[#allocation3 + $0x91] sm:$0xff] }
 0x198   : > { %3909 = vmatpush3.bf16.msra.mxu1 %v4227_v42  ;;  %4185 = vmatprep.subr.msk.bf16.mxu0 %vm322_vm0, %v3073_v16  ;;  %v2597_v42 = vpack.c.bf16 %v2593_v41, %v4718_v52  ;;  %v4265_v52 = vld [vmem:[%s5115_s3 + $0x228] sm:$0xff]  }
 0x199   : > { %3918 = vmatprep.subr.bf16.mxu1 %v4228_v43 }
 0x19a   : > { %3863 = vmatmul.mubr.bf16.vlgmr.msra.gmra.mrb[8].mxu0 %v4709_v39 }
 0x19b   : > { %3911 = vmatmul.mubr.bf16.vlgmr.msra.gmra.mrb[0].mxu1 %v1930_v44  ;;  %3866 = vmatprep.mubr.bf16.mxu0 %v4733_v61  ;;  %v2759_v44 = vld [vmem:[#allocation3 + $0x92] sm:$0xff] }
 0x19c   : > { %3914 = vmatprep.mubr.bf16.mxu1 %v1931_v46  ;;  %3919 = vmatpush3.bf16.msra.mxu1 %v4228_v43  ;;  %v4263_v43 = vld [vmem:[%s5115_s3 + $0x218] sm:$0xff]   ;;  %v2763_v46 = vpack.c.bf16 %v2759_v44, %v4928_v0 }
 0x19d   : > { %3920 = vmatprep.subr.bf16.mxu1 %v4229_v47  ;;  %4039 = vmatpush3.bf16.msra.mxu0 %v3094_v19 }
 0x1a0   : > { %3921 = vmatpush3.bf16.msra.mxu1 %v4229_v47 }
 0x1a1   : > { %3922 = vmatprep.subr.bf16.mxu1 %v4230_v51 }
 0x1a2   : > { %3867 = vmatmul.mubr.bf16.gmra.mrb[12].mxu0 %v4760_v8 }
 0x1a3   : > { %3915 = vmatmul.mubr.bf16.gmra.mrb[4].mxu1 %v1932_v53  ;;  %4040 = vmatprep.mubr.msk.bf16.mxu0 %vm309_vm1, %v3069_v23 }
 0x1a4   : > { %3934 = vmatprep.mubr.bf16.mxu1 %v2095_v40  ;;  %3923 = vmatpush3.bf16.msra.mxu1 %v4230_v51  ;;  %v4237_v40 = vld [vmem:[%s5115_s3 + $0x148] sm:$0xff]  }
 0x1a5   : > { %3924 = vmatprep.subr.bf16.mxu1 %v4231_v57 }
 0x1a8   : > { %3925 = vmatpush3.bf16.msra.mxu1 %v4231_v57 }
 0x1a9   : > { %3926 = vmatprep.subr.bf16.mxu1 %v4232_v54 }
 0x1ac   : > { %3927 = vmatpush3.bf16.msra.mxu1 %v4232_v54 }
 0x1ad   : > { %3928 = vmatprep.subr.bf16.mxu1 %v4233_v62 }
 0x1b0   : > { %3929 = vmatpush3.bf16.msra.mxu1 %v4233_v62 }
 0x1b1   : > { %3930 = vmatprep.subr.bf16.mxu1 %v4234_v63 }
 0x1b4   : > { %3931 = vmatpush3.bf16.msra.mxu1 %v4234_v63 }
 0x1b5   : > { %3932 = vmatprep.subr.bf16.mxu1 %v4235_v11 }
 0x1b8   : > { %3933 = vmatpush3.bf16.msra.mxu1 %v4235_v11 }
 0x1b9   : > { %3942 = vmatprep.subr.bf16.mxu1 %v4236_v15 }
 0x1bb   : > { %3935 = vmatmul.mubr.bf16.vlgmr.msra.gmra.mrb[0].mxu1 %v2096_v26  ;;  %v4242_v26 = vld [vmem:[%s5115_s3 + $0x170] sm:$0xff]  }
 0x1bc   : > { %3938 = vmatprep.mubr.bf16.mxu1 %v2097_v9  ;;  %3943 = vmatpush3.bf16.msra.mxu1 %v4236_v15  ;;  %v4250_v9 = vld [vmem:[%s5115_s3 + $0x1b0] sm:$0xff]  }
 0x1bd   : > { %3944 = vmatprep.subr.bf16.mxu1 %v4237_v40 }
 0x1c0   : > { %3945 = vmatpush3.bf16.msra.mxu1 %v4237_v40 }
 0x1c1   : > { %3946 = vmatprep.subr.bf16.mxu1 %v4238_v5 }
 0x1c3   : > { %3939 = vmatmul.mubr.bf16.gmra.mrb[4].mxu1 %v2098_v1  ;;  %v2264_v1 = vpack.c.bf16 %v4928_v0, %v4794_v28  ;;  %v3070_v28 = vpack.c.bf16 %v3561_v25, %v3560_v24 }
 0x1c4   : > { %3947 = vmatpush3.bf16.msra.mxu1 %v4238_v5  ;;  %3958 = vmatprep.mubr.bf16.mxu1 %v2261_v10  ;;  %v4252_v10 = vld [vmem:[%s5115_s3 + $0x1c0] sm:$0xff]  }
 0x1c5   : > { %3948 = vmatprep.subr.bf16.mxu1 %v4239_v7  ;;  %4041 = vmatmul.mubr.msk.bf16.vlgmr.msra.gmra.mrb[16].mxu0 %vm309_vm1, %v3070_v28 }
 0x1c6   : > { %4044 = vmatprep.mubr.msk.bf16.mxu0 %vm309_vm1, %v3071_v32 }
 0x1c8   : > { %3949 = vmatpush3.bf16.msra.mxu1 %v4239_v7 }
 0x1c9   : > { %3950 = vmatprep.subr.bf16.mxu1 %v4240_v48 }
 0x1cc   : > { %3951 = vmatpush3.bf16.msra.mxu1 %v4240_v48 }
 0x1cd   : > { %3952 = vmatprep.subr.bf16.mxu1 %v4241_v13  ;;  %4045 = vmatmul.mubr.msk.bf16.gmra.mrb[20].mxu0 %vm309_vm1, %v3072_v36 }
 0x1d0   : > { %3953 = vmatpush3.bf16.msra.mxu1 %v4241_v13 }
 0x1d1   : > { %3954 = vmatprep.subr.bf16.mxu1 %v4242_v26 }
 0x1d4   : > { %3955 = vmatpush3.bf16.msra.mxu1 %v4242_v26 }
 0x1d5   : > { %3956 = vmatprep.subr.bf16.mxu1 %v4243_v45 }
 0x1d8   : > { %3957 = vmatpush3.bf16.msra.mxu1 %v4243_v45 }
 0x1d9   : > { %3966 = vmatprep.subr.bf16.mxu1 %v4244_v50 }
 0x1db   : > { %3959 = vmatmul.mubr.bf16.vlgmr.msra.gmra.mrb[0].mxu1 %v2262_v2  ;;  %v4249_v2 = vld [vmem:[%s5115_s3 + $0x1a8] sm:$0xff]  }
 0x1dc   : > { %3962 = vmatprep.mubr.bf16.mxu1 %v2263_v33  ;;  %3967 = vmatpush3.bf16.msra.mxu1 %v4244_v50  ;;  %v4254_v33 = vld [vmem:[%s5115_s3 + $0x1d0] sm:$0xff]  }
 0x1dd   : > { %3968 = vmatprep.subr.bf16.mxu1 %v4245_v55 }
 0x1e0   : > { %3969 = vmatpush3.bf16.msra.mxu1 %v4245_v55 }
 0x1e1   : > { %3970 = vmatprep.subr.bf16.mxu1 %v4246_v56 }
 0x1e3   : > { %3963 = vmatmul.mubr.bf16.gmra.mrb[4].mxu1 %v2264_v1 }
 0x1e4   : > { %3971 = vmatpush3.bf16.msra.mxu1 %v4246_v56  ;;  %3982 = vmatprep.mubr.bf16.mxu1 %v4746_v3  ;;  %v4251_v3 = vld [vmem:[%s5115_s3 + $0x1b8] sm:$0xff]   ;;  %v3549_v56 = vld [vmem:[%s5116_s4] ss:$0 sm:$0xff] }
 0x1e5   : > { %3972 = vmatprep.subr.bf16.mxu1 %v4247_v58 }
 0x1e8   : > { %3973 = vmatpush3.bf16.msra.mxu1 %v4247_v58 }
 0x1e9   : > { %3974 = vmatprep.subr.bf16.mxu1 %v4248_v60 }
 0x1ec   : > { %3975 = vmatpush3.bf16.msra.mxu1 %v4248_v60 }
 0x1ed   : > { %3976 = vmatprep.subr.bf16.mxu1 %v4249_v2 }
 0x1f0   : > { %3977 = vmatpush3.bf16.msra.mxu1 %v4249_v2 }
 0x1f1   : > { %3978 = vmatprep.subr.bf16.mxu1 %v4250_v9 }
 0x1f4   : > { %3979 = vmatpush3.bf16.msra.mxu1 %v4250_v9 }
 0x1f5   : > { %3980 = vmatprep.subr.bf16.mxu1 %v4251_v3 }
 0x1f8   : > { %3981 = vmatpush3.bf16.msra.mxu1 %v4251_v3 }
 0x1f9   : > { %3990 = vmatprep.subr.bf16.mxu1 %v4252_v10 }
 0x1fb   : > { %3983 = vmatmul.mubr.bf16.vlgmr.msra.gmra.mrb[0].mxu1 %v4784_v21  ;;  %v2431_v21 = vpack.c.bf16 %v4310_v20, %v4851_v49  ;;  %v4257_v20 = vld [vmem:[%s5115_s3 + $0x1e8] sm:$0xff]  }
 0x1fc   : > { %3986 = vmatprep.mubr.bf16.mxu1 %v4799_v29  ;;  %3991 = vmatpush3.bf16.msra.mxu1 %v4252_v10  ;;  %v4255_v29 = vld [vmem:[%s5115_s3 + $0x1d8] sm:$0xff]  }
 0x1fd   : > { %3992 = vmatprep.subr.bf16.mxu1 %v4253_v14 }
 0x200   : > { %3993 = vmatpush3.bf16.msra.mxu1 %v4253_v14 }
 0x201   : > { %3994 = vmatprep.subr.bf16.mxu1 %v4254_v33 }
 0x203   : > { %3987 = vmatmul.mubr.bf16.gmra.mrb[4].mxu1 %v2431_v21 }
 0x204   : > { %3995 = vmatpush3.bf16.msra.mxu1 %v4254_v33  ;;  %4006 = vmatprep.mubr.bf16.mxu1 %v4709_v39  ;;  %v4259_v39 = vld [vmem:[%s5115_s3 + $0x1f8] sm:$0xff]  }
 0x205   : > { %3996 = vmatprep.subr.bf16.mxu1 %v4255_v29 }
 0x208   : > { %3997 = vmatpush3.bf16.msra.mxu1 %v4255_v29 }
 0x209   : > { %3998 = vmatprep.subr.bf16.mxu1 %v4256_v38 }
 0x20c   : > { %3999 = vmatpush3.bf16.msra.mxu1 %v4256_v38 }
 0x20d   : > { %4000 = vmatprep.subr.bf16.mxu1 %v4257_v20 }
 0x210   : > { %4001 = vmatpush3.bf16.msra.mxu1 %v4257_v20 }
 0x211   : > { %4002 = vmatprep.subr.bf16.mxu1 %v4258_v59 }
 0x214   : > { %4003 = vmatpush3.bf16.msra.mxu1 %v4258_v59 }
 0x215   : > { %4004 = vmatprep.subr.bf16.mxu1 %v4259_v39 }
 0x218   : > { %4005 = vmatpush3.bf16.msra.mxu1 %v4259_v39 }
 0x219   : > { %4014 = vmatprep.subr.bf16.mxu1 %v4260_v6 }
 0x21b   : > { %4007 = vmatmul.mubr.bf16.vlgmr.msra.gmra.mrb[0].mxu1 %v4733_v61  ;;  %v4264_v61 = vld [vmem:[%s5115_s3 + $0x220] sm:$0xff]  }
 0x21c   : > { %4010 = vmatprep.mubr.bf16.mxu1 %v4760_v8  ;;  %4015 = vmatpush3.bf16.msra.mxu1 %v4260_v6  ;;  %v4266_v8 = vld [vmem:[%s5115_s3 + $0x230] sm:$0xff]  }
 0x21d   : > { %4016 = vmatprep.subr.bf16.mxu1 %v4261_v12 }
 0x220   : > { %4017 = vmatpush3.bf16.msra.mxu1 %v4261_v12 }
 0x221   : > { %4018 = vmatprep.subr.bf16.mxu1 %v4262_v37 }
 0x223   : > { %4011 = vmatmul.mubr.bf16.gmra.mrb[4].mxu1 %v2597_v42 }
 0x224   : > { %4019 = vmatpush3.bf16.msra.mxu1 %v4262_v37  ;;  %4030 = vmatprep.mubr.bf16.mxu1 %v4750_v4  ;;  %v4267_v4 = vld [vmem:[%s5115_s3 + $0x238] sm:$0xff]  }
 0x225   : > { %4020 = vmatprep.subr.bf16.mxu1 %v4263_v43 }
 0x228   : > { %4021 = vmatpush3.bf16.msra.mxu1 %v4263_v43 }
 0x229   : > { %4022 = vmatprep.subr.bf16.mxu1 %v4264_v61 }
 0x22c   : > { %4023 = vmatpush3.bf16.msra.mxu1 %v4264_v61 }
 0x22d   : > { %4024 = vmatprep.subr.bf16.mxu1 %v4265_v52 }
 0x230   : > { %4025 = vmatpush3.bf16.msra.mxu1 %v4265_v52 }
 0x231   : > { %4026 = vmatprep.subr.bf16.mxu1 %v4266_v8 }
 0x234   : > { %4027 = vmatpush3.bf16.msra.mxu1 %v4266_v8 }
 0x235   : > { %4028 = vmatprep.subr.bf16.mxu1 %v4267_v4 }
 0x238   : > { %4029 = vmatpush3.bf16.msra.mxu1 %v4267_v4 }
 0x23b   : > { %4031 = vmatmul.mubr.bf16.vlgmr.msra.gmra.mrb[0].mxu1 %v4788_v22 }
 0x23c   : > { %4034 = vmatprep.mubr.bf16.mxu1 %v4803_v30 }
 0x243   : > { %4035 = vmatmul.mubr.bf16.gmra.mrb[4].mxu1 %v2763_v46 }
 0x26d   : > { %v3864_v47 = vpop.f32.mrb[8].mxu0 }
 0x26e   : > { %v1708_v49 = vpop.f32.mrb[9].mxu0 }
 0x26f   : > { %v3865_v51 = vpop.f32.mrb[10].mxu0 }
 0x270   : > { %v1711_v53 = vpop.f32.mrb[11].mxu0 }
 0x275   : > { %v3868_v57 = vpop.f32.mrb[12].mxu0 }
 0x276   : > { %v1724_v54 = vpop.f32.mrb[13].mxu0 }
 0x277   : > { %v3869_v62 = vpop.f32.mrb[14].mxu0 }
 0x278   : > { %v1727_v63 = vpop.f32.mrb[15].mxu0 }
 0x298   : > { %v5025_v11 = vpop.f32.mrb[16].mxu0 }
 0x299   : > { %v5027_v15 = vpop.f32.mrb[17].mxu0 }
 0x29a   : > { %v5029_v40 = vpop.f32.mrb[18].mxu0 }
 0x29b   : > { %v5031_v22 = vpop.f32.mrb[19].mxu0 }
 0x2a0   : > { %v5033_v30 = vpop.f32.mrb[20].mxu0 }
 0x2a1   : > { %v5035_v5 = vpop.f32.mrb[21].mxu0 }
 0x2a2   : > { %v5037_v7 = vpop.f32.mrb[22].mxu0 }
 0x2a3   : > { %v5039_v48 = vpop.f32.mrb[23].mxu0 }
 0x30e   : > { %v4032_v13 = vpop.f32.mrb[0].mxu1 }
 0x30f   : > { %v4048_v26 = vadd.f32 %v4032_v13, %v3864_v47  ;;  %v2871_v45 = vpop.f32.mrb[1].mxu1 }
 0x310   : > { %v4049_v50 = vadd.f32 %v2871_v45, %v1708_v49  ;;  %v4033_v55 = vpop.f32.mrb[2].mxu1 }
 0x311   : > { %v4050_v0 = vadd.f32 %v4033_v55, %v3865_v51  ;;  %v2874_v1 = vpop.f32.mrb[3].mxu1  ;;  %v5048_v9 = vadd.f32 %v4048_v26, %v3549_v56 }
 0x312   : > { %v4051_v58 = vadd.f32 %v2874_v1, %v1711_v53  ;;  %v5044_v60 = vadd.f32 %v4049_v50, %v3549_v56 }
 0x313   : > { %v5052_v17 = vadd.f32 %v4050_v0, %v3549_v56 }
 0x314   : > { %v5046_v2 = vadd.f32 %v4051_v58, %v3549_v56 }
 0x316   : > { %v2941_v3 = vadd.f32 %v5046_v2, %v5044_v60  ;;  %v4036_v10 = vpop.f32.mrb[4].mxu1 }
 0x317   : > { %v4052_v14 = vadd.f32 %v4036_v10, %v3868_v57  ;;  %v2887_v16 = vpop.f32.mrb[5].mxu1 }
 0x318   : > { %v2942_v18 = vadd.f32 %v2941_v3, %v5048_v9  ;;  %v4053_v19 = vadd.f32 %v2887_v16, %v1724_v54  ;;  %v4037_v23 = vpop.f32.mrb[6].mxu1 }
 0x319   : > { %v4054_v24 = vadd.f32 %v4037_v23, %v3869_v62  ;;  %v2890_v25 = vpop.f32.mrb[7].mxu1  ;;  %v5061_v34 = vadd.f32 %v4052_v14, %v3549_v56 }
 0x31a   : > { %v5055_v27 = vadd.f32 %v4053_v19, %v3549_v56  ;;  %v2943_v28 = vadd.f32 %v2942_v18, %v5052_v17  ;;  %v4055_v31 = vadd.f32 %v2890_v25, %v1727_v63 }
 0x31b   : > { %v5064_v21 = vadd.f32 %v4054_v24, %v3549_v56 }
 0x31c   : > { %v2944_v32 = vadd.f32 %v2943_v28, %v5055_v27  ;;  %v5059_v33 = vadd.f32 %v4055_v31, %v3549_v56 }
 0x31e   : > { %v2945_v35 = vadd.f32 %v2944_v32, %v5059_v33 }
 0x320   : > { %v2946_v29 = vadd.f32 %v2945_v35, %v5061_v34 }
 0x322   : > { %v2947_v36 = vadd.f32 %v2946_v29, %v5064_v21 }
 0x324   : > { %v2948_v38 = vrot.slane %v2947_v36, 4 }
 0x326   : > { %v2949_v20 = vadd.f32 %v2948_v38, %v2947_v36 }
 0x328   : > { %v2950_v59 = vrot.slane %v2949_v20, 2 }
 0x32a   : > { %v2951_v39 = vadd.f32 %v2950_v59, %v2949_v20 }
 0x32c   : > { %v2952_v6 = vrot.slane %v2951_v39, 1 }
 0x32e   : > { %v2953_v12 = vadd.f32 %v2952_v6, %v2951_v39 }
 0x330   : > { %v2955_v37 = vmul.f32 0.015625, %v2953_v12 }
 0x332   : > { %v2956_v41 = vsub.f32 %v5044_v60, %v2955_v37  ;;  %v2957_v42 = vsub.f32 %v5046_v2, %v2955_v37  ;;  %v2958_v43 = vsub.f32 %v5048_v9, %v2955_v37  ;;  %v2959_v61 = vsub.f32 %v5052_v17, %v2955_v37 }
 0x333   : > { %v2960_v4 = vsub.f32 %v5055_v27, %v2955_v37  ;;  %v2961_v47 = vsub.f32 %v5059_v33, %v2955_v37  ;;  %v2962_v53 = vsub.f32 %v5061_v34, %v2955_v37  ;;  %v2963_v62 = vsub.f32 %v5064_v21, %v2955_v37 }
 0x334   : > { %v2964_v52 = vmul.f32 %v2956_v41, %v2956_v41  ;;  %v2965_v8 = vmul.f32 %v2957_v42, %v2957_v42  ;;  %v2966_v44 = vmul.f32 %v2958_v43, %v2958_v43  ;;  %v2967_v49 = vmul.f32 %v2959_v61, %v2959_v61 }
 0x335   : > { %v2968_v57 = vmul.f32 %v2960_v4, %v2960_v4  ;;  %v2969_v63 = vmul.f32 %v2961_v47, %v2961_v47  ;;  %v2970_v26 = vmul.f32 %v2962_v53, %v2962_v53  ;;  %v2971_v50 = vmul.f32 %v2963_v62, %v2963_v62 }
 0x336   : > { %v2972_v46 = vadd.f32 %v2965_v8, %v2964_v52 }
 0x338   : > { %v2973_v51 = vadd.f32 %v2972_v46, %v2966_v44 }
 0x33a   : > { %v2974_v54 = vadd.f32 %v2973_v51, %v2967_v49 }
 0x33c   : > { %v2975_v13 = vadd.f32 %v2974_v54, %v2968_v57 }
 0x33e   : > { %v2976_v45 = vadd.f32 %v2975_v13, %v2969_v63 }
 0x340   : > { %v2977_v55 = vadd.f32 %v2976_v45, %v2970_v26 }
 0x342   : > { %v2978_v56 = vadd.f32 %v2977_v55, %v2971_v50 }
 0x344   : > { %v2979_v0 = vrot.slane %v2978_v56, 4 }
 0x346   : > { %v2980_v1 = vadd.f32 %v2979_v0, %v2978_v56 }
 0x348   : > { %v2981_v58 = vrot.slane %v2980_v1, 2 }
 0x34a   : > { %v2982_v3 = vadd.f32 %v2981_v58, %v2980_v1 }
 0x34c   : > { %v2983_v10 = vrot.slane %v2982_v3, 1 }
 0x34e   : > { %v2984_v14 = vadd.f32 %v2983_v10, %v2982_v3  ;;  %v3566_v3 = vld [vmem:[%s5118_s6] ss:$0 sm:$0xff] }
 0x350   : > { %v2985_v16 = vmul.f32 0.015873017, %v2984_v14 }
 0x352   : > { %v2986_v18 = vadd.f32 0.0001, %v2985_v16  ;;  %v3147_v16 = vadd.f32 %v3566_v3, %v5035_v5  ;;  %v3139_v5 = vadd.f32 %v5025_v11, %v3566_v3 }
 0x354   : > { %v2987_v19 = vmul.f32 4.0, %v2986_v18 }
 0x356   : > { %4268 = vrcp.f32 %v2987_v19 }
 0x360   : > { %v4269_v23 = vpop.eup %4268 }
 0x361   : > { %v2991_v24 = vmul.f32 %v4269_v23, %v2966_v44  ;;  %v2992_v25 = vmul.f32 %v4269_v23, %v2967_v49  ;;  %v2993_v28 = vmul.f32 %v4269_v23, %v2968_v57  ;;  %v2994_v31 = vmul.f32 %v4269_v23, %v2969_v63 }
 0x362   : > { %v2995_v32 = vmul.f32 %v4269_v23, %v2970_v26  ;;  %v2996_v35 = vmul.f32 %v4269_v23, %v2971_v50  ;;  %v2989_v29 = vmul.f32 %v4269_v23, %v2964_v52  ;;  %v2990_v36 = vmul.f32 %v4269_v23, %v2965_v8 }
 0x363   : > { %v3001_v38 = vadd.f32 0.5, %v2993_v28  ;;  %v3002_v20 = vadd.f32 0.5, %v2994_v31  ;;  %v2999_v59 = vadd.f32 0.5, %v2991_v24  ;;  %v3000_v39 = vadd.f32 0.5, %v2992_v25 }
 0x364   : > { %v3003_v6 = vadd.f32 0.5, %v2995_v32  ;;  %v2997_v12 = vadd.f32 0.5, %v2989_v29  ;;  %v2998_v42 = vadd.f32 0.5, %v2990_v36  ;;  %v3004_v43 = vadd.f32 0.5, %v2996_v35 }
 0x365   : > { %v3554_v37 = vmul.f32 -1.442695, %v3001_v38  ;;  %v3555_v41 = vmul.f32 -1.442695, %v3002_v20  ;;  %v3552_v4 = vmul.f32 -1.442695, %v2999_v59  ;;  %v3150_v23 = vadd.f32 %v3566_v3, %v5039_v48 }
 0x366   : > { %v3556_v61 = vmul.f32 -1.442695, %v3003_v6  ;;  %v3550_v44 = vmul.f32 -1.442695, %v2997_v12  ;;  %v3553_v46 = vmul.f32 -1.442695, %v3000_v39  ;;  %v3155_v28 = vadd.f32 %v5033_v30, %v3566_v3 }
 0x367   : > { %4270 = vpow2.f32 %v3554_v37  ;;  %v3551_v47 = vmul.f32 -1.442695, %v2998_v42  ;;  %v3557_v52 = vmul.f32 -1.442695, %v3004_v43  ;;  %v3142_v59 = vadd.f32 %v5029_v40, %v3566_v3 }
 0x368   : > { %4272 = vpow2.f32 %v3555_v41  ;;  %v3158_v40 = vadd.f32 %v5037_v7, %v3566_v3 }
 0x369   : > { %4274 = vpow2.f32 %v3556_v61 }
 0x36a   : > { %4276 = vpow2.f32 %v3552_v4 }
 0x36b   : > { %4278 = vpow2.f32 %v3550_v44 }
 0x36c   : > { %4280 = vpow2.f32 %v3553_v46 }
 0x36d   : > { %4282 = vpow2.f32 %v3551_v47 }
 0x36e   : > { %4284 = vpow2.f32 %v3557_v52 }
 0x371   : > { %v4271_v8 = vpop.eup %4270 }
 0x372   : > { %v4273_v49 = vpop.eup %4272  ;;  %v3033_v51 = vadd.f32 1.0, %v4271_v8 }
 0x373   : > { %v4275_v53 = vpop.eup %4274  ;;  %v3034_v57 = vadd.f32 1.0, %v4273_v49 }
 0x374   : > { %v4277_v54 = vpop.eup %4276  ;;  %v3035_v62 = vadd.f32 1.0, %v4275_v53  ;;  %4286 = vrcp.f32 %v3033_v51 }
 0x375   : > { %v4279_v63 = vpop.eup %4278  ;;  %4288 = vrcp.f32 %v3034_v57  ;;  %v3031_v13 = vadd.f32 1.0, %v4277_v54 }
 0x376   : > { %v4281_v26 = vpop.eup %4280  ;;  %v3029_v45 = vadd.f32 1.0, %v4279_v63  ;;  %4290 = vrcp.f32 %v3035_v62 }
 0x377   : > { %v4283_v50 = vpop.eup %4282  ;;  %4292 = vrcp.f32 %v3031_v13  ;;  %v3032_v55 = vadd.f32 1.0, %v4281_v26 }
 0x378   : > { %v4285_v56 = vpop.eup %4284  ;;  %4294 = vrcp.f32 %v3029_v45  ;;  %v3030_v0 = vadd.f32 1.0, %v4283_v50 }
 0x379   : > { %4296 = vrcp.f32 %v3032_v55  ;;  %v3036_v1 = vadd.f32 1.0, %v4285_v56 }
 0x37a   : > { %4298 = vrcp.f32 %v3030_v0 }
 0x37b   : > { %4300 = vrcp.f32 %v3036_v1 }
 0x37e   : > { %v4287_v58 = vpop.eup %4286 }
 0x37f   : > { %v4289_v10 = vpop.eup %4288  ;;  %v3057_v14 = vmul.f32 %v4287_v58, %v5055_v27 }
 0x380   : > { %v4291_v18 = vpop.eup %4290  ;;  %v3058_v19 = vmul.f32 %v4289_v10, %v5059_v33 }
 0x381   : > { %v4293_v24 = vpop.eup %4292  ;;  %v3059_v25 = vmul.f32 %v4291_v18, %v5061_v34  ;;  %v3165_v31 = vadd.f32 %v3147_v16, %v3057_v14  ;;  %v3131_v34 = vadd.f32 %v3566_v3, %v5027_v15 }
 0x382   : > { %v4295_v32 = vpop.eup %4294  ;;  %v3055_v27 = vmul.f32 %v4293_v24, %v5048_v9  ;;  %v3166_v35 = vadd.f32 %v3150_v23, %v3058_v19 }
 0x383   : > { %v4297_v33 = vpop.eup %4296  ;;  %v3053_v48 = vmul.f32 %v4295_v32, %v5044_v60  ;;  %v3167_v29 = vadd.f32 %v3155_v28, %v3059_v25  ;;  %v3173_v30 = vmax.f32 %v3165_v31, 0.0  ;;  %v3134_v60 = vadd.f32 %v3566_v3, %v5031_v22 }
 0x384   : > { %v4299_v36 = vpop.eup %4298  ;;  %v3163_v38 = vadd.f32 %v3139_v5, %v3055_v27  ;;  %v3056_v20 = vmul.f32 %v4297_v33, %v5052_v17  ;;  %v3174_v9 = vmax.f32 %v3166_v35, 0.0 }
 0x385   : > { %v4301_v11 = vpop.eup %4300  ;;  %v3161_v39 = vadd.f32 %v3131_v34, %v3053_v48  ;;  %v3054_v6 = vmul.f32 %v4299_v36, %v5046_v2  ;;  %v3175_v15 = vmax.f32 %v3167_v29, 0.0  ;;  %3181 = vst [vmem:[%s5089_s25 + $0x20] sm:$0xff] %v3173_v30 }
 0x386   : > { %v3171_v12 = vmax.f32 %v3163_v38, 0.0  ;;  %v3164_v37 = vadd.f32 %v3142_v59, %v3056_v20  ;;  %v3060_v17 = vmul.f32 %v4301_v11, %v5064_v21  ;;  %3182 = vst [vmem:[%s5089_s25 + $0x28] sm:$0xff] %v3174_v9 }
 0x387   : > { %v3169_v41 = vmax.f32 %v3161_v39, 0.0  ;;  %v3162_v42 = vadd.f32 %v3134_v60, %v3054_v6  ;;  %3183 = vst [vmem:[%s5089_s25 + $0x30] sm:$0xff] %v3175_v15 }
 0x388   : > { %3179 = vst [vmem:[%s5089_s25 + $0x10] sm:$0xff] %v3171_v12  ;;  %v3172_v43 = vmax.f32 %v3164_v37, 0.0  ;;  %v3168_v2 = vadd.f32 %v3158_v40, %v3060_v17 }
 0x389   : > { %3177 = vst [vmem:[%s5089_s25] sm:$0xff] %v3169_v41  ;;  %v3170_v22 = vmax.f32 %v3162_v42, 0.0 }
 0x38a   : > { %3180 = vst [vmem:[%s5089_s25 + $0x18] sm:$0xff] %v3172_v43  ;;  %v3176_v61 = vmax.f32 %v3168_v2, 0.0 }
 0x38b   : > { %3178 = vst [vmem:[%s5089_s25 + $0x8] sm:$0xff] %v3170_v22 }
 0x38c   : > { %3184 = vst [vmem:[%s5089_s25 + $0x38] sm:$0xff] %v3176_v61 }
 0x38d PF: > { %s17_s24 = sadd.s32 1, %s4308_s24  }
 0x38e   : > { %p14_p4 = scmp.ge.s32.totalorder %s17_s24, 4  }
 0x390   :  { %16 = sbr.rel (!%p14_p4) target bundleno = 1 (0x1), region = 101 }

</bundles_post_ra>
